<compile_context>
chip_gen: v6e
topology: v6e:2x2x1
jax: 0.10.0
libtpu: 0.0.40
codegen_flags: <defaults>
</compile_context>

<pallas_src>
import functools

import jax
import jax.numpy as jnp
from jax import lax
from jax.experimental import pallas as pl
from jax.experimental.pallas import tpu as pltpu


def _double_conv_kernel(x_ref, w1_ref, b1_ref, w2_ref, b2_ref, o_ref,
                        pad_ref, tap_ref, *, height, width, pad, imgs,
                        precision):
    # x_ref:  (imgs, c_max, H*W)   images, channel-major, spatial in lanes
    # w1_ref: (c_mid, 9*c_max)     conv1 weights (BN1 scale folded), tap-major cols
    # b1_ref: (c_mid, 1)           BN1 shift
    # w2_ref: (c_out, 9*c_max)     conv2 weights (BN2 scale folded), tap-major cols
    # b2_ref: (c_out, 1)           BN2 shift
    # o_ref:  (imgs, c_out, H*W)
    # pad_ref: (c_max, H*W + 2*pad)  zero-bordered line buffer (VMEM scratch)
    # tap_ref: (9*c_max, H*W)        stacked shifted taps      (VMEM scratch)
    hw = height * width
    c_max = pad_ref.shape[0]
    c_mid = w1_ref.shape[0]

    # Row-edge masks, built once per grid step at full (c_max, hw) shape so the
    # masked taps below are plain VALU vselects (no per-tap sublane broadcasts).
    col = lax.broadcasted_iota(jnp.int32, (c_max, hw), 1) % width
    ok_left = col >= 1              # a dx = -1 neighbour exists in this image row
    ok_right = col <= width - 2     # a dx = +1 neighbour exists in this image row

    # Zero only the two border strips of the line buffer: they are the only
    # lanes ever read as conv padding; the interior is fully overwritten before
    # each conv. Done every grid step (NOT just at step 0), so it stays correct
    # when the parallel grid axis is split across TensorCores.
    zero_strip = jnp.zeros((c_max, pad), jnp.float32)
    pad_ref[:, 0:pad] = zero_strip
    pad_ref[:, pad + hw:pad + hw + pad] = zero_strip

    offsets = tuple((dy, dx) for dy in (-1, 0, 1) for dx in (-1, 0, 1))

    def stack_taps():
        # Gather the 9 shifted, edge-masked views of the padded line buffer
        # into tap_ref so the whole conv contraction is one MXU matmul.
        for k, (dy, dx) in enumerate(offsets):
            off = pad + dy * width + dx                      # static lane offset
            t = pad_ref[:, off:off + hw]                     # (c_max, hw)
            if dx == -1:
                t = jnp.where(ok_left, t, 0.0)
            elif dx == 1:
                t = jnp.where(ok_right, t, 0.0)
            tap_ref[k * c_max:(k + 1) * c_max, :] = t

    for b in range(imgs):                                    # static unrolled loop
        # --- conv1 (BN1 scale folded into weights) + shift + ReLU ---
        pad_ref[:, pad:pad + hw] = x_ref[b].astype(jnp.float32)
        stack_taps()
        h1 = jnp.dot(w1_ref[...], tap_ref[...],
                     preferred_element_type=jnp.float32, precision=precision)
        h1 = jnp.maximum(h1 + b1_ref[...], 0.0)              # (c_mid, hw)

        # --- conv2 (BN2 scale folded into weights) + shift + ReLU ---
        pad_ref[0:c_mid, pad:pad + hw] = h1
        if c_mid < c_max:                                    # keep unused rows zero
            pad_ref[c_mid:c_max, pad:pad + hw] = jnp.zeros(
                (c_max - c_mid, hw), jnp.float32)
        stack_taps()
        h2 = jnp.dot(w2_ref[...], tap_ref[...],
                     preferred_element_type=jnp.float32, precision=precision)
        o_ref[b] = jnp.maximum(h2 + b2_ref[...], 0.0).astype(o_ref.dtype)


@functools.partial(jax.jit, static_argnames=("precision",))
def double_conv(x, w1, gamma1, beta1, mean1, var1,
                w2, gamma2, beta2, mean2, var2, *, precision=None):
    """x: (N, C_in, H, W) f32. w1: (C_mid, C_in, 3, 3). w2: (C_out, C_mid, 3, 3)."""
    eps = 1e-5
    n, c_in, height, width = x.shape
    c_mid = w1.shape[0]
    c_out = w2.shape[0]
    hw = height * width
    c_max = max(c_in, c_mid)

    # Fold inference-mode BatchNorm into the conv weights (per-channel scale)
    # plus a per-channel shift added before the ReLU.
    s1 = gamma1 * lax.rsqrt(var1 + eps)
    s2 = gamma2 * lax.rsqrt(var2 + eps)
    w1_eff = w1 * s1[:, None, None, None]
    w2_eff = w2 * s2[:, None, None, None]
    shift1 = (beta1 - mean1 * s1)[:, None]                   # (C_mid, 1)
    shift2 = (beta2 - mean2 * s2)[:, None]                   # (C_out, 1)

    # Weight matrices whose columns match the stacked tap-matrix rows
    # (row = tap*c_max + channel); channels padded up to c_max get zero columns.
    def tap_major(w_eff, c_layer):
        co = w_eff.shape[0]
        w_p = jnp.pad(w_eff, ((0, 0), (0, c_max - c_layer), (0, 0), (0, 0)))
        return jnp.transpose(w_p, (0, 2, 3, 1)).reshape(co, 9 * c_max)

    w1_mat = tap_major(w1_eff, c_in)                         # (C_mid, 9*c_max)
    w2_mat = tap_major(w2_eff, c_mid)                        # (C_out, 9*c_max)

    # Keep NCHW; flatten spatial into the lane axis (free, contiguous reshape).
    # Pad the channel axis to c_max so every in-kernel store is sublane-aligned.
    x_flat = jnp.pad(x.reshape(n, c_in, hw),
                     ((0, 0), (0, c_max - c_in), (0, 0)))

    pad = ((width + 1 + 127) // 128) * 128     # lane-aligned zero border >= W+1

    # Grid: as few steps as possible (amortize ~0.35us/step + tiny DMAs on the
    # single-TC v5e/v6e) while keeping >= 2 parallel steps so both v7x
    # TensorCores get work.
    if n >= 2 and n % 2 == 0:
        num_steps, imgs = 2, n // 2
    else:
        num_steps, imgs = n, 1

    kernel = functools.partial(_double_conv_kernel, height=height, width=width,
                               pad=pad, imgs=imgs, precision=precision)

    flops = 2 * 9 * (c_mid * c_in + c_out * c_mid) * hw * n
    bytes_accessed = 4 * (x_flat.size + n * c_out * hw + w1_mat.size
                          + w2_mat.size + shift1.size + shift2.size)

    out_flat = pl.pallas_call(
        kernel,
        out_shape=jax.ShapeDtypeStruct((n, c_out, hw), x.dtype),
        grid_spec=pltpu.PrefetchScalarGridSpec(
            num_scalar_prefetch=0,
            grid=(num_steps,),
            in_specs=[
                pl.BlockSpec((imgs, c_max, hw), lambda i: (i, 0, 0)),
                pl.BlockSpec((c_mid, 9 * c_max), lambda i: (0, 0)),
                pl.BlockSpec((c_mid, 1), lambda i: (0, 0)),
                pl.BlockSpec((c_out, 9 * c_max), lambda i: (0, 0)),
                pl.BlockSpec((c_out, 1), lambda i: (0, 0)),
            ],
            out_specs=pl.BlockSpec((imgs, c_out, hw), lambda i: (i, 0, 0)),
            # NOTE(v7x): for real UNet sizes re-budget these scratches and the
            # double-buffered I/O blocks against 64 MiB physical / 32 MiB
            # scoped VMEM per TensorCore (or raise vmem_limit_bytes).
            scratch_shapes=[
                pltpu.VMEM((c_max, hw + 2 * pad), jnp.float32),   # line buffer
                pltpu.VMEM((9 * c_max, hw), jnp.float32),         # stacked taps
            ],
        ),
        compiler_params=pltpu.CompilerParams(
            dimension_semantics=("parallel",)),
        cost_estimate=pl.CostEstimate(flops=flops, transcendentals=0,
                                      bytes_accessed=bytes_accessed),
    )(x_flat, w1_mat, shift1, w2_mat, shift2)

    return out_flat.reshape(n, c_out, height, width)


def reference_double_conv(x, w1, gamma1, beta1, mean1, var1,
                          w2, gamma2, beta2, mean2, var2, eps=1e-5):
    """Pure-JAX reference of DoubleConv (eval-mode BatchNorm)."""
    def conv(z, w):
        return lax.conv_general_dilated(
            z, w, window_strides=(1, 1), padding=((1, 1), (1, 1)),
            dimension_numbers=("NCHW", "OIHW", "NCHW"),
            precision=lax.Precision.HIGHEST)

    def bn_relu(z, g, b, m, v):
        zn = (z - m[None, :, None, None]) * lax.rsqrt(v[None, :, None, None] + eps)
        return jnp.maximum(zn * g[None, :, None, None] + b[None, :, None, None], 0.0)

    y = bn_relu(conv(x, w1), gamma1, beta1, mean1, var1)
    return bn_relu(conv(y, w2), gamma2, beta2, mean2, var2)


if __name__ == "__main__":
    # Shapes consistent with DoubleConv(in_channels=4, out_channels=8):
    # mid_channels defaults to out_channels. batch=2, spatial 16x16.
    N, C_IN, C_MID, C_OUT, H, W = 2, 4, 8, 8, 16, 16

    key = jax.random.PRNGKey(0)
    (kx, kw1, kw2, kg1, kb1, kg2, kb2,
     km1, kv1, km2, kv2) = jax.random.split(key, 11)

    x = jax.random.normal(kx, (N, C_IN, H, W), dtype=jnp.float32)

    # Conv weights (bias=False in the module), Kaiming-uniform-like scale.
    bw1 = 1.0 / (C_IN * 9) ** 0.5
    w1 = jax.random.uniform(kw1, (C_MID, C_IN, 3, 3), minval=-bw1, maxval=bw1,
                            dtype=jnp.float32)
    bw2 = 1.0 / (C_MID * 9) ** 0.5
    w2 = jax.random.uniform(kw2, (C_OUT, C_MID, 3, 3), minval=-bw2, maxval=bw2,
                            dtype=jnp.float32)

    # BatchNorm affine params + running stats (inference-mode forward).
    gamma1 = jax.random.uniform(kg1, (C_MID,), minval=0.5, maxval=1.5, dtype=jnp.float32)
    beta1 = jax.random.uniform(kb1, (C_MID,), minval=-0.5, maxval=0.5, dtype=jnp.float32)
    mean1 = 0.1 * jax.random.normal(km1, (C_MID,), dtype=jnp.float32)
    var1 = jax.random.uniform(kv1, (C_MID,), minval=0.5, maxval=1.5, dtype=jnp.float32)
    gamma2 = jax.random.uniform(kg2, (C_OUT,), minval=0.5, maxval=1.5, dtype=jnp.float32)
    beta2 = jax.random.uniform(kb2, (C_OUT,), minval=-0.5, maxval=0.5, dtype=jnp.float32)
    mean2 = 0.1 * jax.random.normal(km2, (C_OUT,), dtype=jnp.float32)
    var2 = jax.random.uniform(kv2, (C_OUT,), minval=0.5, maxval=1.5, dtype=jnp.float32)

    args = (x, w1, gamma1, beta1, mean1, var1,
            w2, gamma2, beta2, mean2, var2)

    # Prefer the highest-precision MXU lowering for the f32 matmuls; fall back
    # to the default lowering if this jax/Mosaic version rejects the precision
    # argument inside a Pallas kernel.
    try:
        out = jax.block_until_ready(
            double_conv(*args, precision=lax.Precision.HIGHEST))
    except Exception:
        out = jax.block_until_ready(double_conv(*args, precision=None))

    ref = reference_double_conv(*args)
    assert out.shape == (N, C_OUT, H, W)
    err = float(jnp.max(jnp.abs(out - ref)))
    # Tolerance leaves headroom for the MXU's multi-pass f32 rounding across
    # TPU generations; typical error is orders of magnitude smaller.
    assert jnp.allclose(out, ref, atol=1e-3, rtol=1e-3), err

    print("KERNEL_OK")
</pallas_src>

<mosaic_0001>
module attributes {stable_mosaic.version = 11 : i64} {
  func.func @_double_conv_kernel(%arg0: i32, %arg1: memref<1x8x256xf32, #tpu.memory_space<vmem>>, %arg2: memref<8x72xf32, #tpu.memory_space<vmem>>, %arg3: memref<8x1xf32, #tpu.memory_space<vmem>>, %arg4: memref<8x72xf32, #tpu.memory_space<vmem>>, %arg5: memref<8x1xf32, #tpu.memory_space<vmem>>, %arg6: memref<1x8x256xf32, #tpu.memory_space<vmem>>, %arg7: memref<8x512xf32, #tpu.memory_space<vmem>>, %arg8: memref<72x256xf32, #tpu.memory_space<vmem>>) attributes {dimension_semantics = [#tpu.dimension_semantics<parallel>], iteration_bounds = array<i64: 2>, scalar_prefetch = 0 : i64, scratch_operands = 2 : i64, tpu.core_type = #tpu.core_type<tc>, window_params = [{transform_indices = @transform_0, window_bounds = array<i64: 1, 8, 256>}, {pipeline_mode = #tpu.pipeline_mode<synchronous>, transform_indices = @transform_1, window_bounds = array<i64: 8, 72>}, {pipeline_mode = #tpu.pipeline_mode<synchronous>, transform_indices = @transform_2, window_bounds = array<i64: 8, 1>}, {pipeline_mode = #tpu.pipeline_mode<synchronous>, transform_indices = @transform_3, window_bounds = array<i64: 8, 72>}, {pipeline_mode = #tpu.pipeline_mode<synchronous>, transform_indices = @transform_4, window_bounds = array<i64: 8, 1>}, {transform_indices = @transform_5, window_bounds = array<i64: 1, 8, 256>}]} {
    %0 = tpu.iota {dimensions = array<i32: 1>} : vector<8x256xi32>
    %c16_i32 = arith.constant 16 : i32
    %c0_i32 = arith.constant 0 : i32
    %1 = arith.cmpi eq, %c16_i32, %c0_i32 : i32
    %c1_i32 = arith.constant 1 : i32
    %2 = arith.select %1, %c1_i32, %c16_i32 : i32
    %3 = vector.broadcast %2 : i32 to vector<8x256xi32>
    %4 = arith.remsi %0, %3 : vector<8x256xi32>
    %c0_i32_0 = arith.constant 0 : i32
    %5 = vector.broadcast %c0_i32_0 : i32 to vector<8x256xi32>
    %6 = arith.cmpi ne, %4, %5 : vector<8x256xi32>
    %c0_i32_1 = arith.constant 0 : i32
    %7 = vector.broadcast %c0_i32_1 : i32 to vector<8x256xi32>
    %8 = arith.cmpi slt, %4, %7 : vector<8x256xi32>
    %c0_i32_2 = arith.constant 0 : i32
    %9 = arith.cmpi slt, %2, %c0_i32_2 : i32
    %10 = vector.broadcast %9 : i1 to vector<8x256xi1>
    %11 = vector.broadcast %10 : vector<8x256xi1> to vector<8x256xi1>
    %12 = arith.xori %8, %11 : vector<8x256xi1>
    %13 = arith.andi %12, %6 : vector<8x256xi1>
    %14 = vector.broadcast %2 : i32 to vector<8x256xi32>
    %15 = arith.addi %4, %14 : vector<8x256xi32>
    %16 = arith.select %13, %15, %4 : vector<8x256xi1>, vector<8x256xi32>
    %c1_i32_3 = arith.constant 1 : i32
    %17 = vector.broadcast %c1_i32_3 : i32 to vector<8x256xi32>
    %18 = arith.cmpi sge, %16, %17 : vector<8x256xi32>
    %c14_i32 = arith.constant 14 : i32
    %19 = vector.broadcast %c14_i32 : i32 to vector<8x256xi32>
    %20 = arith.cmpi sle, %16, %19 : vector<8x256xi32>
    %cst = arith.constant 0.000000e+00 : f32
    %21 = vector.broadcast %cst : f32 to vector<8x128xf32>
    %c0 = arith.constant 0 : index
    %c0_4 = arith.constant 0 : index
    %22 = vector.load %arg7[%c0, %c0_4] : memref<8x512xf32, #tpu.memory_space<vmem>>, vector<8x128xf32>
    tpu.vector_store %arg7[%c0, %c0_4], %21 {strides = array<i32>} : memref<8x512xf32, #tpu.memory_space<vmem>>, vector<8x128xf32>,
    %c0_5 = arith.constant 0 : index
    %c384 = arith.constant 384 : index
    %23 = vector.load %arg7[%c0_5, %c384] : memref<8x512xf32, #tpu.memory_space<vmem>>, vector<8x128xf32>
    tpu.vector_store %arg7[%c0_5, %c384], %21 {strides = array<i32>} : memref<8x512xf32, #tpu.memory_space<vmem>>, vector<8x128xf32>,
    %c0_6 = arith.constant 0 : index
    %c0_7 = arith.constant 0 : index
    %c0_8 = arith.constant 0 : index
    %24 = vector.load %arg1[%c0_6, %c0_7, %c0_8] : memref<1x8x256xf32, #tpu.memory_space<vmem>>, vector<1x8x256xf32>
    %25 = vector.shape_cast %24 : vector<1x8x256xf32> to vector<8x256xf32>
    %c0_9 = arith.constant 0 : index
    %c128 = arith.constant 128 : index
    %26 = vector.load %arg7[%c0_9, %c128] : memref<8x512xf32, #tpu.memory_space<vmem>>, vector<8x256xf32>
    tpu.vector_store %arg7[%c0_9, %c128], %25 {strides = array<i32>} : memref<8x512xf32, #tpu.memory_space<vmem>>, vector<8x256xf32>,
    %c0_10 = arith.constant 0 : index
    %c111 = arith.constant 111 : index
    %27 = vector.load %arg7[%c0_10, %c111] : memref<8x512xf32, #tpu.memory_space<vmem>>, vector<8x256xf32>
    %cst_11 = arith.constant 0.000000e+00 : f32
    %28 = vector.broadcast %cst_11 : f32 to vector<8x256xf32>
    %29 = arith.select %18, %27, %28 : vector<8x256xi1>, vector<8x256xf32>
    %c0_12 = arith.constant 0 : index
    %c0_13 = arith.constant 0 : index
    %30 = vector.load %arg8[%c0_12, %c0_13] : memref<72x256xf32, #tpu.memory_space<vmem>>, vector<8x256xf32>
    tpu.vector_store %arg8[%c0_12, %c0_13], %29 {strides = array<i32>} : memref<72x256xf32, #tpu.memory_space<vmem>>, vector<8x256xf32>,
    %c0_14 = arith.constant 0 : index
    %c112 = arith.constant 112 : index
    %31 = vector.load %arg7[%c0_14, %c112] : memref<8x512xf32, #tpu.memory_space<vmem>>, vector<8x256xf32>
    %c8 = arith.constant 8 : index
    %c0_15 = arith.constant 0 : index
    %32 = vector.load %arg8[%c8, %c0_15] : memref<72x256xf32, #tpu.memory_space<vmem>>, vector<8x256xf32>
    tpu.vector_store %arg8[%c8, %c0_15], %31 {strides = array<i32>} : memref<72x256xf32, #tpu.memory_space<vmem>>, vector<8x256xf32>,
    %c0_16 = arith.constant 0 : index
    %c113 = arith.constant 113 : index
    %33 = vector.load %arg7[%c0_16, %c113] : memref<8x512xf32, #tpu.memory_space<vmem>>, vector<8x256xf32>
    %cst_17 = arith.constant 0.000000e+00 : f32
    %34 = vector.broadcast %cst_17 : f32 to vector<8x256xf32>
    %35 = arith.select %20, %33, %34 : vector<8x256xi1>, vector<8x256xf32>
    %c16 = arith.constant 16 : index
    %c0_18 = arith.constant 0 : index
    %36 = vector.load %arg8[%c16, %c0_18] : memref<72x256xf32, #tpu.memory_space<vmem>>, vector<8x256xf32>
    tpu.vector_store %arg8[%c16, %c0_18], %35 {strides = array<i32>} : memref<72x256xf32, #tpu.memory_space<vmem>>, vector<8x256xf32>,
    %c0_19 = arith.constant 0 : index
    %c127 = arith.constant 127 : index
    %37 = vector.load %arg7[%c0_19, %c127] : memref<8x512xf32, #tpu.memory_space<vmem>>, vector<8x256xf32>
    %cst_20 = arith.constant 0.000000e+00 : f32
    %38 = vector.broadcast %cst_20 : f32 to vector<8x256xf32>
    %39 = arith.select %18, %37, %38 : vector<8x256xi1>, vector<8x256xf32>
    %c24 = arith.constant 24 : index
    %c0_21 = arith.constant 0 : index
    %40 = vector.load %arg8[%c24, %c0_21] : memref<72x256xf32, #tpu.memory_space<vmem>>, vector<8x256xf32>
    tpu.vector_store %arg8[%c24, %c0_21], %39 {strides = array<i32>} : memref<72x256xf32, #tpu.memory_space<vmem>>, vector<8x256xf32>,
    %c0_22 = arith.constant 0 : index
    %c128_23 = arith.constant 128 : index
    %41 = vector.load %arg7[%c0_22, %c128_23] : memref<8x512xf32, #tpu.memory_space<vmem>>, vector<8x256xf32>
    %c32 = arith.constant 32 : index
    %c0_24 = arith.constant 0 : index
    %42 = vector.load %arg8[%c32, %c0_24] : memref<72x256xf32, #tpu.memory_space<vmem>>, vector<8x256xf32>
    tpu.vector_store %arg8[%c32, %c0_24], %41 {strides = array<i32>} : memref<72x256xf32, #tpu.memory_space<vmem>>, vector<8x256xf32>,
    %c0_25 = arith.constant 0 : index
    %c129 = arith.constant 129 : index
    %43 = vector.load %arg7[%c0_25, %c129] : memref<8x512xf32, #tpu.memory_space<vmem>>, vector<8x256xf32>
    %cst_26 = arith.constant 0.000000e+00 : f32
    %44 = vector.broadcast %cst_26 : f32 to vector<8x256xf32>
    %45 = arith.select %20, %43, %44 : vector<8x256xi1>, vector<8x256xf32>
    %c40 = arith.constant 40 : index
    %c0_27 = arith.constant 0 : index
    %46 = vector.load %arg8[%c40, %c0_27] : memref<72x256xf32, #tpu.memory_space<vmem>>, vector<8x256xf32>
    tpu.vector_store %arg8[%c40, %c0_27], %45 {strides = array<i32>} : memref<72x256xf32, #tpu.memory_space<vmem>>, vector<8x256xf32>,
    %c0_28 = arith.constant 0 : index
    %c143 = arith.constant 143 : index
    %47 = vector.load %arg7[%c0_28, %c143] : memref<8x512xf32, #tpu.memory_space<vmem>>, vector<8x256xf32>
    %cst_29 = arith.constant 0.000000e+00 : f32
    %48 = vector.broadcast %cst_29 : f32 to vector<8x256xf32>
    %49 = arith.select %18, %47, %48 : vector<8x256xi1>, vector<8x256xf32>
    %c48 = arith.constant 48 : index
    %c0_30 = arith.constant 0 : index
    %50 = vector.load %arg8[%c48, %c0_30] : memref<72x256xf32, #tpu.memory_space<vmem>>, vector<8x256xf32>
    tpu.vector_store %arg8[%c48, %c0_30], %49 {strides = array<i32>} : memref<72x256xf32, #tpu.memory_space<vmem>>, vector<8x256xf32>,
    %c0_31 = arith.constant 0 : index
    %c144 = arith.constant 144 : index
    %51 = vector.load %arg7[%c0_31, %c144] : memref<8x512xf32, #tpu.memory_space<vmem>>, vector<8x256xf32>
    %c56 = arith.constant 56 : index
    %c0_32 = arith.constant 0 : index
    %52 = vector.load %arg8[%c56, %c0_32] : memref<72x256xf32, #tpu.memory_space<vmem>>, vector<8x256xf32>
    tpu.vector_store %arg8[%c56, %c0_32], %51 {strides = array<i32>} : memref<72x256xf32, #tpu.memory_space<vmem>>, vector<8x256xf32>,
    %c0_33 = arith.constant 0 : index
    %c145 = arith.constant 145 : index
    %53 = vector.load %arg7[%c0_33, %c145] : memref<8x512xf32, #tpu.memory_space<vmem>>, vector<8x256xf32>
    %cst_34 = arith.constant 0.000000e+00 : f32
    %54 = vector.broadcast %cst_34 : f32 to vector<8x256xf32>
    %55 = arith.select %20, %53, %54 : vector<8x256xi1>, vector<8x256xf32>
    %c64 = arith.constant 64 : index
    %c0_35 = arith.constant 0 : index
    %56 = vector.load %arg8[%c64, %c0_35] : memref<72x256xf32, #tpu.memory_space<vmem>>, vector<8x256xf32>
    tpu.vector_store %arg8[%c64, %c0_35], %55 {strides = array<i32>} : memref<72x256xf32, #tpu.memory_space<vmem>>, vector<8x256xf32>,
    %c0_36 = arith.constant 0 : index
    %c0_37 = arith.constant 0 : index
    %57 = vector.load %arg2[%c0_36, %c0_37] : memref<8x72xf32, #tpu.memory_space<vmem>>, vector<8x72xf32>
    %c0_38 = arith.constant 0 : index
    %c0_39 = arith.constant 0 : index
    %58 = vector.load %arg8[%c0_38, %c0_39] : memref<72x256xf32, #tpu.memory_space<vmem>>, vector<72x256xf32>
    %cst_40 = arith.constant dense<0.000000e+00> : vector<8x256xf32>
    %59 = tpu.matmul %57, %58, %cst_40 {dimension_numbers = #tpu.dot_dimension_numbers<[1], [0], [0], [1], [0, 0, 1, 1], [], []>, precision = #tpu.contract_precision<fp32>} : vector<8x72xf32>, vector<72x256xf32>, vector<8x256xf32> -> vector<8x256xf32>
    %c0_41 = arith.constant 0 : index
    %c0_42 = arith.constant 0 : index
    %60 = vector.load %arg3[%c0_41, %c0_42] : memref<8x1xf32, #tpu.memory_space<vmem>>, vector<8x1xf32>
    %61 = vector.broadcast %60 : vector<8x1xf32> to vector<8x256xf32>
    %62 = arith.addf %59, %61 : vector<8x256xf32>
    %cst_43 = arith.constant 0.000000e+00 : f32
    %63 = vector.broadcast %cst_43 : f32 to vector<8x256xf32>
    %64 = arith.maximumf %62, %63 : vector<8x256xf32>
    %c0_44 = arith.constant 0 : index
    %c128_45 = arith.constant 128 : index
    %65 = vector.load %arg7[%c0_44, %c128_45] : memref<8x512xf32, #tpu.memory_space<vmem>>, vector<8x256xf32>
    tpu.vector_store %arg7[%c0_44, %c128_45], %64 {strides = array<i32>} : memref<8x512xf32, #tpu.memory_space<vmem>>, vector<8x256xf32>,
    %c0_46 = arith.constant 0 : index
    %c111_47 = arith.constant 111 : index
    %66 = vector.load %arg7[%c0_46, %c111_47] : memref<8x512xf32, #tpu.memory_space<vmem>>, vector<8x256xf32>
    %cst_48 = arith.constant 0.000000e+00 : f32
    %67 = vector.broadcast %cst_48 : f32 to vector<8x256xf32>
    %68 = arith.select %18, %66, %67 : vector<8x256xi1>, vector<8x256xf32>
    %c0_49 = arith.constant 0 : index
    %c0_50 = arith.constant 0 : index
    %69 = vector.load %arg8[%c0_49, %c0_50] : memref<72x256xf32, #tpu.memory_space<vmem>>, vector<8x256xf32>
    tpu.vector_store %arg8[%c0_49, %c0_50], %68 {strides = array<i32>} : memref<72x256xf32, #tpu.memory_space<vmem>>, vector<8x256xf32>,
    %c0_51 = arith.constant 0 : index
    %c112_52 = arith.constant 112 : index
    %70 = vector.load %arg7[%c0_51, %c112_52] : memref<8x512xf32, #tpu.memory_space<vmem>>, vector<8x256xf32>
    %c8_53 = arith.constant 8 : index
    %c0_54 = arith.constant 0 : index
    %71 = vector.load %arg8[%c8_53, %c0_54] : memref<72x256xf32, #tpu.memory_space<vmem>>, vector<8x256xf32>
    tpu.vector_store %arg8[%c8_53, %c0_54], %70 {strides = array<i32>} : memref<72x256xf32, #tpu.memory_space<vmem>>, vector<8x256xf32>,
    %c0_55 = arith.constant 0 : index
    %c113_56 = arith.constant 113 : index
    %72 = vector.load %arg7[%c0_55, %c113_56] : memref<8x512xf32, #tpu.memory_space<vmem>>, vector<8x256xf32>
    %cst_57 = arith.constant 0.000000e+00 : f32
    %73 = vector.broadcast %cst_57 : f32 to vector<8x256xf32>
    %74 = arith.select %20, %72, %73 : vector<8x256xi1>, vector<8x256xf32>
    %c16_58 = arith.constant 16 : index
    %c0_59 = arith.constant 0 : index
    %75 = vector.load %arg8[%c16_58, %c0_59] : memref<72x256xf32, #tpu.memory_space<vmem>>, vector<8x256xf32>
    tpu.vector_store %arg8[%c16_58, %c0_59], %74 {strides = array<i32>} : memref<72x256xf32, #tpu.memory_space<vmem>>, vector<8x256xf32>,
    %c0_60 = arith.constant 0 : index
    %c127_61 = arith.constant 127 : index
    %76 = vector.load %arg7[%c0_60, %c127_61] : memref<8x512xf32, #tpu.memory_space<vmem>>, vector<8x256xf32>
    %cst_62 = arith.constant 0.000000e+00 : f32
    %77 = vector.broadcast %cst_62 : f32 to vector<8x256xf32>
    %78 = arith.select %18, %76, %77 : vector<8x256xi1>, vector<8x256xf32>
    %c24_63 = arith.constant 24 : index
    %c0_64 = arith.constant 0 : index
    %79 = vector.load %arg8[%c24_63, %c0_64] : memref<72x256xf32, #tpu.memory_space<vmem>>, vector<8x256xf32>
    tpu.vector_store %arg8[%c24_63, %c0_64], %78 {strides = array<i32>} : memref<72x256xf32, #tpu.memory_space<vmem>>, vector<8x256xf32>,
    %c0_65 = arith.constant 0 : index
    %c128_66 = arith.constant 128 : index
    %80 = vector.load %arg7[%c0_65, %c128_66] : memref<8x512xf32, #tpu.memory_space<vmem>>, vector<8x256xf32>
    %c32_67 = arith.constant 32 : index
    %c0_68 = arith.constant 0 : index
    %81 = vector.load %arg8[%c32_67, %c0_68] : memref<72x256xf32, #tpu.memory_space<vmem>>, vector<8x256xf32>
    tpu.vector_store %arg8[%c32_67, %c0_68], %80 {strides = array<i32>} : memref<72x256xf32, #tpu.memory_space<vmem>>, vector<8x256xf32>,
    %c0_69 = arith.constant 0 : index
    %c129_70 = arith.constant 129 : index
    %82 = vector.load %arg7[%c0_69, %c129_70] : memref<8x512xf32, #tpu.memory_space<vmem>>, vector<8x256xf32>
    %cst_71 = arith.constant 0.000000e+00 : f32
    %83 = vector.broadcast %cst_71 : f32 to vector<8x256xf32>
    %84 = arith.select %20, %82, %83 : vector<8x256xi1>, vector<8x256xf32>
    %c40_72 = arith.constant 40 : index
    %c0_73 = arith.constant 0 : index
    %85 = vector.load %arg8[%c40_72, %c0_73] : memref<72x256xf32, #tpu.memory_space<vmem>>, vector<8x256xf32>
    tpu.vector_store %arg8[%c40_72, %c0_73], %84 {strides = array<i32>} : memref<72x256xf32, #tpu.memory_space<vmem>>, vector<8x256xf32>,
    %c0_74 = arith.constant 0 : index
    %c143_75 = arith.constant 143 : index
    %86 = vector.load %arg7[%c0_74, %c143_75] : memref<8x512xf32, #tpu.memory_space<vmem>>, vector<8x256xf32>
    %cst_76 = arith.constant 0.000000e+00 : f32
    %87 = vector.broadcast %cst_76 : f32 to vector<8x256xf32>
    %88 = arith.select %18, %86, %87 : vector<8x256xi1>, vector<8x256xf32>
    %c48_77 = arith.constant 48 : index
    %c0_78 = arith.constant 0 : index
    %89 = vector.load %arg8[%c48_77, %c0_78] : memref<72x256xf32, #tpu.memory_space<vmem>>, vector<8x256xf32>
    tpu.vector_store %arg8[%c48_77, %c0_78], %88 {strides = array<i32>} : memref<72x256xf32, #tpu.memory_space<vmem>>, vector<8x256xf32>,
    %c0_79 = arith.constant 0 : index
    %c144_80 = arith.constant 144 : index
    %90 = vector.load %arg7[%c0_79, %c144_80] : memref<8x512xf32, #tpu.memory_space<vmem>>, vector<8x256xf32>
    %c56_81 = arith.constant 56 : index
    %c0_82 = arith.constant 0 : index
    %91 = vector.load %arg8[%c56_81, %c0_82] : memref<72x256xf32, #tpu.memory_space<vmem>>, vector<8x256xf32>
    tpu.vector_store %arg8[%c56_81, %c0_82], %90 {strides = array<i32>} : memref<72x256xf32, #tpu.memory_space<vmem>>, vector<8x256xf32>,
    %c0_83 = arith.constant 0 : index
    %c145_84 = arith.constant 145 : index
    %92 = vector.load %arg7[%c0_83, %c145_84] : memref<8x512xf32, #tpu.memory_space<vmem>>, vector<8x256xf32>
    %cst_85 = arith.constant 0.000000e+00 : f32
    %93 = vector.broadcast %cst_85 : f32 to vector<8x256xf32>
    %94 = arith.select %20, %92, %93 : vector<8x256xi1>, vector<8x256xf32>
    %c64_86 = arith.constant 64 : index
    %c0_87 = arith.constant 0 : index
    %95 = vector.load %arg8[%c64_86, %c0_87] : memref<72x256xf32, #tpu.memory_space<vmem>>, vector<8x256xf32>
    tpu.vector_store %arg8[%c64_86, %c0_87], %94 {strides = array<i32>} : memref<72x256xf32, #tpu.memory_space<vmem>>, vector<8x256xf32>,
    %c0_88 = arith.constant 0 : index
    %c0_89 = arith.constant 0 : index
    %96 = vector.load %arg4[%c0_88, %c0_89] : memref<8x72xf32, #tpu.memory_space<vmem>>, vector<8x72xf32>
    %c0_90 = arith.constant 0 : index
    %c0_91 = arith.constant 0 : index
    %97 = vector.load %arg8[%c0_90, %c0_91] : memref<72x256xf32, #tpu.memory_space<vmem>>, vector<72x256xf32>
    %cst_92 = arith.constant dense<0.000000e+00> : vector<8x256xf32>
    %98 = tpu.matmul %96, %97, %cst_92 {dimension_numbers = #tpu.dot_dimension_numbers<[1], [0], [0], [1], [0, 0, 1, 1], [], []>, precision = #tpu.contract_precision<fp32>} : vector<8x72xf32>, vector<72x256xf32>, vector<8x256xf32> -> vector<8x256xf32>
    %c0_93 = arith.constant 0 : index
    %c0_94 = arith.constant 0 : index
    %99 = vector.load %arg5[%c0_93, %c0_94] : memref<8x1xf32, #tpu.memory_space<vmem>>, vector<8x1xf32>
    %100 = vector.broadcast %99 : vector<8x1xf32> to vector<8x256xf32>
    %101 = arith.addf %98, %100 : vector<8x256xf32>
    %cst_95 = arith.constant 0.000000e+00 : f32
    %102 = vector.broadcast %cst_95 : f32 to vector<8x256xf32>
    %103 = arith.maximumf %101, %102 : vector<8x256xf32>
    %c0_96 = arith.constant 0 : index
    %c0_97 = arith.constant 0 : index
    %c0_98 = arith.constant 0 : index
    %104 = vector.load %arg6[%c0_96, %c0_97, %c0_98] : memref<1x8x256xf32, #tpu.memory_space<vmem>>, vector<1x8x256xf32>
    %105 = vector.shape_cast %104 : vector<1x8x256xf32> to vector<8x256xf32>
    %106 = vector.shape_cast %103 : vector<8x256xf32> to vector<1x8x256xf32>
    tpu.vector_store %arg6[%c0_96, %c0_97, %c0_98], %106 {strides = array<i32>} : memref<1x8x256xf32, #tpu.memory_space<vmem>>, vector<1x8x256xf32>,
    return
  }
  func.func @transform_0(%arg0: i32) -> (i32, i32, i32) {
    %c0_i32 = arith.constant 0 : i32
    %c0_i32_0 = arith.constant 0 : i32
    %c0_i32_1 = arith.constant 0 : i32
    return %arg0, %c0_i32, %c0_i32_0 : i32, i32, i32
  }
  func.func @transform_1(%arg0: i32) -> (i32, i32) {
    %c0_i32 = arith.constant 0 : i32
    %c0_i32_0 = arith.constant 0 : i32
    %c0_i32_1 = arith.constant 0 : i32
    return %c0_i32, %c0_i32_0 : i32, i32
  }
  func.func @transform_2(%arg0: i32) -> (i32, i32) {
    %c0_i32 = arith.constant 0 : i32
    %c0_i32_0 = arith.constant 0 : i32
    %c0_i32_1 = arith.constant 0 : i32
    return %c0_i32, %c0_i32_0 : i32, i32
  }
  func.func @transform_3(%arg0: i32) -> (i32, i32) {
    %c0_i32 = arith.constant 0 : i32
    %c0_i32_0 = arith.constant 0 : i32
    %c0_i32_1 = arith.constant 0 : i32
    return %c0_i32, %c0_i32_0 : i32, i32
  }
  func.func @transform_4(%arg0: i32) -> (i32, i32) {
    %c0_i32 = arith.constant 0 : i32
    %c0_i32_0 = arith.constant 0 : i32
    %c0_i32_1 = arith.constant 0 : i32
    return %c0_i32, %c0_i32_0 : i32, i32
  }
  func.func @transform_5(%arg0: i32) -> (i32, i32, i32) {
    %c0_i32 = arith.constant 0 : i32
    %c0_i32_0 = arith.constant 0 : i32
    %c0_i32_1 = arith.constant 0 : i32
    return %arg0, %c0_i32, %c0_i32_0 : i32, i32, i32
  }
}

module attributes {stable_mosaic.version = 11 : i64} {
  func.func @_double_conv_kernel(%arg0: i32, %arg1: memref<1x8x256xf32, #tpu.memory_space<vmem>>, %arg2: memref<8x72xf32, #tpu.memory_space<vmem>>, %arg3: memref<8x1xf32, #tpu.memory_space<vmem>>, %arg4: memref<8x72xf32, #tpu.memory_space<vmem>>, %arg5: memref<8x1xf32, #tpu.memory_space<vmem>>, %arg6: memref<1x8x256xf32, #tpu.memory_space<vmem>>, %arg7: memref<8x512xf32, #tpu.memory_space<vmem>>, %arg8: memref<72x256xf32, #tpu.memory_space<vmem>>) attributes {dimension_semantics = [#tpu.dimension_semantics<parallel>], iteration_bounds = array<i64: 2>, scalar_prefetch = 0 : i64, scratch_operands = 2 : i64, tpu.core_type = #tpu.core_type<tc>, window_params = [{transform_indices = @transform_0, window_bounds = array<i64: 1, 8, 256>}, {pipeline_mode = #tpu.pipeline_mode<synchronous>, transform_indices = @transform_1, window_bounds = array<i64: 8, 72>}, {pipeline_mode = #tpu.pipeline_mode<synchronous>, transform_indices = @transform_2, window_bounds = array<i64: 8, 1>}, {pipeline_mode = #tpu.pipeline_mode<synchronous>, transform_indices = @transform_3, window_bounds = array<i64: 8, 72>}, {pipeline_mode = #tpu.pipeline_mode<synchronous>, transform_indices = @transform_4, window_bounds = array<i64: 8, 1>}, {transform_indices = @transform_5, window_bounds = array<i64: 1, 8, 256>}]} {
    %0 = tpu.iota {dimensions = array<i32: 1>} : vector<8x256xi32>
    %c16_i32 = arith.constant 16 : i32
    %c0_i32 = arith.constant 0 : i32
    %1 = arith.cmpi eq, %c16_i32, %c0_i32 : i32
    %c1_i32 = arith.constant 1 : i32
    %2 = arith.select %1, %c1_i32, %c16_i32 : i32
    %3 = vector.broadcast %2 : i32 to vector<8x256xi32>
    %4 = arith.remsi %0, %3 : vector<8x256xi32>
    %c0_i32_0 = arith.constant 0 : i32
    %5 = vector.broadcast %c0_i32_0 : i32 to vector<8x256xi32>
    %6 = arith.cmpi ne, %4, %5 : vector<8x256xi32>
    %c0_i32_1 = arith.constant 0 : i32
    %7 = vector.broadcast %c0_i32_1 : i32 to vector<8x256xi32>
    %8 = arith.cmpi slt, %4, %7 : vector<8x256xi32>
    %c0_i32_2 = arith.constant 0 : i32
    %9 = arith.cmpi slt, %2, %c0_i32_2 : i32
    %10 = vector.broadcast %9 : i1 to vector<8x256xi1>
    %11 = vector.broadcast %10 : vector<8x256xi1> to vector<8x256xi1>
    %12 = arith.xori %8, %11 : vector<8x256xi1>
    %13 = arith.andi %12, %6 : vector<8x256xi1>
    %14 = vector.broadcast %2 : i32 to vector<8x256xi32>
    %15 = arith.addi %4, %14 : vector<8x256xi32>
    %16 = arith.select %13, %15, %4 : vector<8x256xi1>, vector<8x256xi32>
    %c1_i32_3 = arith.constant 1 : i32
    %17 = vector.broadcast %c1_i32_3 : i32 to vector<8x256xi32>
    %18 = arith.cmpi sge, %16, %17 : vector<8x256xi32>
    %c14_i32 = arith.constant 14 : i32
    %19 = vector.broadcast %c14_i32 : i32 to vector<8x256xi32>
    %20 = arith.cmpi sle, %16, %19 : vector<8x256xi32>
    %cst = arith.constant 0.000000e+00 : f32
    %21 = vector.broadcast %cst : f32 to vector<8x128xf32>
    %c0 = arith.constant 0 : index
    %c0_4 = arith.constant 0 : index
    %22 = vector.load %arg7[%c0, %c0_4] : memref<8x512xf32, #tpu.memory_space<vmem>>, vector<8x128xf32>
    tpu.vector_store %arg7[%c0, %c0_4], %21 {strides = array<i32>} : memref<8x512xf32, #tpu.memory_space<vmem>>, vector<8x128xf32>,
    %c0_5 = arith.constant 0 : index
    %c384 = arith.constant 384 : index
    %23 = vector.load %arg7[%c0_5, %c384] : memref<8x512xf32, #tpu.memory_space<vmem>>, vector<8x128xf32>
    tpu.vector_store %arg7[%c0_5, %c384], %21 {strides = array<i32>} : memref<8x512xf32, #tpu.memory_space<vmem>>, vector<8x128xf32>,
    %c0_6 = arith.constant 0 : index
    %c0_7 = arith.constant 0 : index
    %c0_8 = arith.constant 0 : index
    %24 = vector.load %arg1[%c0_6, %c0_7, %c0_8] : memref<1x8x256xf32, #tpu.memory_space<vmem>>, vector<1x8x256xf32>
    %25 = vector.shape_cast %24 : vector<1x8x256xf32> to vector<8x256xf32>
    %c0_9 = arith.constant 0 : index
    %c128 = arith.constant 128 : index
    %26 = vector.load %arg7[%c0_9, %c128] : memref<8x512xf32, #tpu.memory_space<vmem>>, vector<8x256xf32>
    tpu.vector_store %arg7[%c0_9, %c128], %25 {strides = array<i32>} : memref<8x512xf32, #tpu.memory_space<vmem>>, vector<8x256xf32>,
    %c0_10 = arith.constant 0 : index
    %c111 = arith.constant 111 : index
    %27 = vector.load %arg7[%c0_10, %c111] : memref<8x512xf32, #tpu.memory_space<vmem>>, vector<8x256xf32>
    %cst_11 = arith.constant 0.000000e+00 : f32
    %28 = vector.broadcast %cst_11 : f32 to vector<8x256xf32>
    %29 = arith.select %18, %27, %28 : vector<8x256xi1>, vector<8x256xf32>
    %c0_12 = arith.constant 0 : index
    %c0_13 = arith.constant 0 : index
    %30 = vector.load %arg8[%c0_12, %c0_13] : memref<72x256xf32, #tpu.memory_space<vmem>>, vector<8x256xf32>
    tpu.vector_store %arg8[%c0_12, %c0_13], %29 {strides = array<i32>} : memref<72x256xf32, #tpu.memory_space<vmem>>, vector<8x256xf32>,
    %c0_14 = arith.constant 0 : index
    %c112 = arith.constant 112 : index
    %31 = vector.load %arg7[%c0_14, %c112] : memref<8x512xf32, #tpu.memory_space<vmem>>, vector<8x256xf32>
    %c8 = arith.constant 8 : index
    %c0_15 = arith.constant 0 : index
    %32 = vector.load %arg8[%c8, %c0_15] : memref<72x256xf32, #tpu.memory_space<vmem>>, vector<8x256xf32>
    tpu.vector_store %arg8[%c8, %c0_15], %31 {strides = array<i32>} : memref<72x256xf32, #tpu.memory_space<vmem>>, vector<8x256xf32>,
    %c0_16 = arith.constant 0 : index
    %c113 = arith.constant 113 : index
    %33 = vector.load %arg7[%c0_16, %c113] : memref<8x512xf32, #tpu.memory_space<vmem>>, vector<8x256xf32>
    %cst_17 = arith.constant 0.000000e+00 : f32
    %34 = vector.broadcast %cst_17 : f32 to vector<8x256xf32>
    %35 = arith.select %20, %33, %34 : vector<8x256xi1>, vector<8x256xf32>
    %c16 = arith.constant 16 : index
    %c0_18 = arith.constant 0 : index
    %36 = vector.load %arg8[%c16, %c0_18] : memref<72x256xf32, #tpu.memory_space<vmem>>, vector<8x256xf32>
    tpu.vector_store %arg8[%c16, %c0_18], %35 {strides = array<i32>} : memref<72x256xf32, #tpu.memory_space<vmem>>, vector<8x256xf32>,
    %c0_19 = arith.constant 0 : index
    %c127 = arith.constant 127 : index
    %37 = vector.load %arg7[%c0_19, %c127] : memref<8x512xf32, #tpu.memory_space<vmem>>, vector<8x256xf32>
    %cst_20 = arith.constant 0.000000e+00 : f32
    %38 = vector.broadcast %cst_20 : f32 to vector<8x256xf32>
    %39 = arith.select %18, %37, %38 : vector<8x256xi1>, vector<8x256xf32>
    %c24 = arith.constant 24 : index
    %c0_21 = arith.constant 0 : index
    %40 = vector.load %arg8[%c24, %c0_21] : memref<72x256xf32, #tpu.memory_space<vmem>>, vector<8x256xf32>
    tpu.vector_store %arg8[%c24, %c0_21], %39 {strides = array<i32>} : memref<72x256xf32, #tpu.memory_space<vmem>>, vector<8x256xf32>,
    %c0_22 = arith.constant 0 : index
    %c128_23 = arith.constant 128 : index
    %41 = vector.load %arg7[%c0_22, %c128_23] : memref<8x512xf32, #tpu.memory_space<vmem>>, vector<8x256xf32>
    %c32 = arith.constant 32 : index
    %c0_24 = arith.constant 0 : index
    %42 = vector.load %arg8[%c32, %c0_24] : memref<72x256xf32, #tpu.memory_space<vmem>>, vector<8x256xf32>
    tpu.vector_store %arg8[%c32, %c0_24], %41 {strides = array<i32>} : memref<72x256xf32, #tpu.memory_space<vmem>>, vector<8x256xf32>,
    %c0_25 = arith.constant 0 : index
    %c129 = arith.constant 129 : index
    %43 = vector.load %arg7[%c0_25, %c129] : memref<8x512xf32, #tpu.memory_space<vmem>>, vector<8x256xf32>
    %cst_26 = arith.constant 0.000000e+00 : f32
    %44 = vector.broadcast %cst_26 : f32 to vector<8x256xf32>
    %45 = arith.select %20, %43, %44 : vector<8x256xi1>, vector<8x256xf32>
    %c40 = arith.constant 40 : index
    %c0_27 = arith.constant 0 : index
    %46 = vector.load %arg8[%c40, %c0_27] : memref<72x256xf32, #tpu.memory_space<vmem>>, vector<8x256xf32>
    tpu.vector_store %arg8[%c40, %c0_27], %45 {strides = array<i32>} : memref<72x256xf32, #tpu.memory_space<vmem>>, vector<8x256xf32>,
    %c0_28 = arith.constant 0 : index
    %c143 = arith.constant 143 : index
    %47 = vector.load %arg7[%c0_28, %c143] : memref<8x512xf32, #tpu.memory_space<vmem>>, vector<8x256xf32>
    %cst_29 = arith.constant 0.000000e+00 : f32
    %48 = vector.broadcast %cst_29 : f32 to vector<8x256xf32>
    %49 = arith.select %18, %47, %48 : vector<8x256xi1>, vector<8x256xf32>
    %c48 = arith.constant 48 : index
    %c0_30 = arith.constant 0 : index
    %50 = vector.load %arg8[%c48, %c0_30] : memref<72x256xf32, #tpu.memory_space<vmem>>, vector<8x256xf32>
    tpu.vector_store %arg8[%c48, %c0_30], %49 {strides = array<i32>} : memref<72x256xf32, #tpu.memory_space<vmem>>, vector<8x256xf32>,
    %c0_31 = arith.constant 0 : index
    %c144 = arith.constant 144 : index
    %51 = vector.load %arg7[%c0_31, %c144] : memref<8x512xf32, #tpu.memory_space<vmem>>, vector<8x256xf32>
    %c56 = arith.constant 56 : index
    %c0_32 = arith.constant 0 : index
    %52 = vector.load %arg8[%c56, %c0_32] : memref<72x256xf32, #tpu.memory_space<vmem>>, vector<8x256xf32>
    tpu.vector_store %arg8[%c56, %c0_32], %51 {strides = array<i32>} : memref<72x256xf32, #tpu.memory_space<vmem>>, vector<8x256xf32>,
    %c0_33 = arith.constant 0 : index
    %c145 = arith.constant 145 : index
    %53 = vector.load %arg7[%c0_33, %c145] : memref<8x512xf32, #tpu.memory_space<vmem>>, vector<8x256xf32>
    %cst_34 = arith.constant 0.000000e+00 : f32
    %54 = vector.broadcast %cst_34 : f32 to vector<8x256xf32>
    %55 = arith.select %20, %53, %54 : vector<8x256xi1>, vector<8x256xf32>
    %c64 = arith.constant 64 : index
    %c0_35 = arith.constant 0 : index
    %56 = vector.load %arg8[%c64, %c0_35] : memref<72x256xf32, #tpu.memory_space<vmem>>, vector<8x256xf32>
    tpu.vector_store %arg8[%c64, %c0_35], %55 {strides = array<i32>} : memref<72x256xf32, #tpu.memory_space<vmem>>, vector<8x256xf32>,
    %c0_36 = arith.constant 0 : index
    %c0_37 = arith.constant 0 : index
    %57 = vector.load %arg2[%c0_36, %c0_37] : memref<8x72xf32, #tpu.memory_space<vmem>>, vector<8x72xf32>
    %c0_38 = arith.constant 0 : index
    %c0_39 = arith.constant 0 : index
    %58 = vector.load %arg8[%c0_38, %c0_39] : memref<72x256xf32, #tpu.memory_space<vmem>>, vector<72x256xf32>
    %cst_40 = arith.constant dense<0.000000e+00> : vector<8x256xf32>
    %59 = tpu.matmul %57, %58, %cst_40 {dimension_numbers = #tpu.dot_dimension_numbers<[1], [0], [0], [1], [0, 0, 1, 1], [], []>} : vector<8x72xf32>, vector<72x256xf32>, vector<8x256xf32> -> vector<8x256xf32>
    %c0_41 = arith.constant 0 : index
    %c0_42 = arith.constant 0 : index
    %60 = vector.load %arg3[%c0_41, %c0_42] : memref<8x1xf32, #tpu.memory_space<vmem>>, vector<8x1xf32>
    %61 = vector.broadcast %60 : vector<8x1xf32> to vector<8x256xf32>
    %62 = arith.addf %59, %61 : vector<8x256xf32>
    %cst_43 = arith.constant 0.000000e+00 : f32
    %63 = vector.broadcast %cst_43 : f32 to vector<8x256xf32>
    %64 = arith.maximumf %62, %63 : vector<8x256xf32>
    %c0_44 = arith.constant 0 : index
    %c128_45 = arith.constant 128 : index
    %65 = vector.load %arg7[%c0_44, %c128_45] : memref<8x512xf32, #tpu.memory_space<vmem>>, vector<8x256xf32>
    tpu.vector_store %arg7[%c0_44, %c128_45], %64 {strides = array<i32>} : memref<8x512xf32, #tpu.memory_space<vmem>>, vector<8x256xf32>,
    %c0_46 = arith.constant 0 : index
    %c111_47 = arith.constant 111 : index
    %66 = vector.load %arg7[%c0_46, %c111_47] : memref<8x512xf32, #tpu.memory_space<vmem>>, vector<8x256xf32>
    %cst_48 = arith.constant 0.000000e+00 : f32
    %67 = vector.broadcast %cst_48 : f32 to vector<8x256xf32>
    %68 = arith.select %18, %66, %67 : vector<8x256xi1>, vector<8x256xf32>
    %c0_49 = arith.constant 0 : index
    %c0_50 = arith.constant 0 : index
    %69 = vector.load %arg8[%c0_49, %c0_50] : memref<72x256xf32, #tpu.memory_space<vmem>>, vector<8x256xf32>
    tpu.vector_store %arg8[%c0_49, %c0_50], %68 {strides = array<i32>} : memref<72x256xf32, #tpu.memory_space<vmem>>, vector<8x256xf32>,
    %c0_51 = arith.constant 0 : index
    %c112_52 = arith.constant 112 : index
    %70 = vector.load %arg7[%c0_51, %c112_52] : memref<8x512xf32, #tpu.memory_space<vmem>>, vector<8x256xf32>
    %c8_53 = arith.constant 8 : index
    %c0_54 = arith.constant 0 : index
    %71 = vector.load %arg8[%c8_53, %c0_54] : memref<72x256xf32, #tpu.memory_space<vmem>>, vector<8x256xf32>
    tpu.vector_store %arg8[%c8_53, %c0_54], %70 {strides = array<i32>} : memref<72x256xf32, #tpu.memory_space<vmem>>, vector<8x256xf32>,
    %c0_55 = arith.constant 0 : index
    %c113_56 = arith.constant 113 : index
    %72 = vector.load %arg7[%c0_55, %c113_56] : memref<8x512xf32, #tpu.memory_space<vmem>>, vector<8x256xf32>
    %cst_57 = arith.constant 0.000000e+00 : f32
    %73 = vector.broadcast %cst_57 : f32 to vector<8x256xf32>
    %74 = arith.select %20, %72, %73 : vector<8x256xi1>, vector<8x256xf32>
    %c16_58 = arith.constant 16 : index
    %c0_59 = arith.constant 0 : index
    %75 = vector.load %arg8[%c16_58, %c0_59] : memref<72x256xf32, #tpu.memory_space<vmem>>, vector<8x256xf32>
    tpu.vector_store %arg8[%c16_58, %c0_59], %74 {strides = array<i32>} : memref<72x256xf32, #tpu.memory_space<vmem>>, vector<8x256xf32>,
    %c0_60 = arith.constant 0 : index
    %c127_61 = arith.constant 127 : index
    %76 = vector.load %arg7[%c0_60, %c127_61] : memref<8x512xf32, #tpu.memory_space<vmem>>, vector<8x256xf32>
    %cst_62 = arith.constant 0.000000e+00 : f32
    %77 = vector.broadcast %cst_62 : f32 to vector<8x256xf32>
    %78 = arith.select %18, %76, %77 : vector<8x256xi1>, vector<8x256xf32>
    %c24_63 = arith.constant 24 : index
    %c0_64 = arith.constant 0 : index
    %79 = vector.load %arg8[%c24_63, %c0_64] : memref<72x256xf32, #tpu.memory_space<vmem>>, vector<8x256xf32>
    tpu.vector_store %arg8[%c24_63, %c0_64], %78 {strides = array<i32>} : memref<72x256xf32, #tpu.memory_space<vmem>>, vector<8x256xf32>,
    %c0_65 = arith.constant 0 : index
    %c128_66 = arith.constant 128 : index
    %80 = vector.load %arg7[%c0_65, %c128_66] : memref<8x512xf32, #tpu.memory_space<vmem>>, vector<8x256xf32>
    %c32_67 = arith.constant 32 : index
    %c0_68 = arith.constant 0 : index
    %81 = vector.load %arg8[%c32_67, %c0_68] : memref<72x256xf32, #tpu.memory_space<vmem>>, vector<8x256xf32>
    tpu.vector_store %arg8[%c32_67, %c0_68], %80 {strides = array<i32>} : memref<72x256xf32, #tpu.memory_space<vmem>>, vector<8x256xf32>,
    %c0_69 = arith.constant 0 : index
    %c129_70 = arith.constant 129 : index
    %82 = vector.load %arg7[%c0_69, %c129_70] : memref<8x512xf32, #tpu.memory_space<vmem>>, vector<8x256xf32>
    %cst_71 = arith.constant 0.000000e+00 : f32
    %83 = vector.broadcast %cst_71 : f32 to vector<8x256xf32>
    %84 = arith.select %20, %82, %83 : vector<8x256xi1>, vector<8x256xf32>
    %c40_72 = arith.constant 40 : index
    %c0_73 = arith.constant 0 : index
    %85 = vector.load %arg8[%c40_72, %c0_73] : memref<72x256xf32, #tpu.memory_space<vmem>>, vector<8x256xf32>
    tpu.vector_store %arg8[%c40_72, %c0_73], %84 {strides = array<i32>} : memref<72x256xf32, #tpu.memory_space<vmem>>, vector<8x256xf32>,
    %c0_74 = arith.constant 0 : index
    %c143_75 = arith.constant 143 : index
    %86 = vector.load %arg7[%c0_74, %c143_75] : memref<8x512xf32, #tpu.memory_space<vmem>>, vector<8x256xf32>
    %cst_76 = arith.constant 0.000000e+00 : f32
    %87 = vector.broadcast %cst_76 : f32 to vector<8x256xf32>
    %88 = arith.select %18, %86, %87 : vector<8x256xi1>, vector<8x256xf32>
    %c48_77 = arith.constant 48 : index
    %c0_78 = arith.constant 0 : index
    %89 = vector.load %arg8[%c48_77, %c0_78] : memref<72x256xf32, #tpu.memory_space<vmem>>, vector<8x256xf32>
    tpu.vector_store %arg8[%c48_77, %c0_78], %88 {strides = array<i32>} : memref<72x256xf32, #tpu.memory_space<vmem>>, vector<8x256xf32>,
    %c0_79 = arith.constant 0 : index
    %c144_80 = arith.constant 144 : index
    %90 = vector.load %arg7[%c0_79, %c144_80] : memref<8x512xf32, #tpu.memory_space<vmem>>, vector<8x256xf32>
    %c56_81 = arith.constant 56 : index
    %c0_82 = arith.constant 0 : index
    %91 = vector.load %arg8[%c56_81, %c0_82] : memref<72x256xf32, #tpu.memory_space<vmem>>, vector<8x256xf32>
    tpu.vector_store %arg8[%c56_81, %c0_82], %90 {strides = array<i32>} : memref<72x256xf32, #tpu.memory_space<vmem>>, vector<8x256xf32>,
    %c0_83 = arith.constant 0 : index
    %c145_84 = arith.constant 145 : index
    %92 = vector.load %arg7[%c0_83, %c145_84] : memref<8x512xf32, #tpu.memory_space<vmem>>, vector<8x256xf32>
    %cst_85 = arith.constant 0.000000e+00 : f32
    %93 = vector.broadcast %cst_85 : f32 to vector<8x256xf32>
    %94 = arith.select %20, %92, %93 : vector<8x256xi1>, vector<8x256xf32>
    %c64_86 = arith.constant 64 : index
    %c0_87 = arith.constant 0 : index
    %95 = vector.load %arg8[%c64_86, %c0_87] : memref<72x256xf32, #tpu.memory_space<vmem>>, vector<8x256xf32>
    tpu.vector_store %arg8[%c64_86, %c0_87], %94 {strides = array<i32>} : memref<72x256xf32, #tpu.memory_space<vmem>>, vector<8x256xf32>,
    %c0_88 = arith.constant 0 : index
    %c0_89 = arith.constant 0 : index
    %96 = vector.load %arg4[%c0_88, %c0_89] : memref<8x72xf32, #tpu.memory_space<vmem>>, vector<8x72xf32>
    %c0_90 = arith.constant 0 : index
    %c0_91 = arith.constant 0 : index
    %97 = vector.load %arg8[%c0_90, %c0_91] : memref<72x256xf32, #tpu.memory_space<vmem>>, vector<72x256xf32>
    %cst_92 = arith.constant dense<0.000000e+00> : vector<8x256xf32>
    %98 = tpu.matmul %96, %97, %cst_92 {dimension_numbers = #tpu.dot_dimension_numbers<[1], [0], [0], [1], [0, 0, 1, 1], [], []>} : vector<8x72xf32>, vector<72x256xf32>, vector<8x256xf32> -> vector<8x256xf32>
    %c0_93 = arith.constant 0 : index
    %c0_94 = arith.constant 0 : index
    %99 = vector.load %arg5[%c0_93, %c0_94] : memref<8x1xf32, #tpu.memory_space<vmem>>, vector<8x1xf32>
    %100 = vector.broadcast %99 : vector<8x1xf32> to vector<8x256xf32>
    %101 = arith.addf %98, %100 : vector<8x256xf32>
    %cst_95 = arith.constant 0.000000e+00 : f32
    %102 = vector.broadcast %cst_95 : f32 to vector<8x256xf32>
    %103 = arith.maximumf %101, %102 : vector<8x256xf32>
    %c0_96 = arith.constant 0 : index
    %c0_97 = arith.constant 0 : index
    %c0_98 = arith.constant 0 : index
    %104 = vector.load %arg6[%c0_96, %c0_97, %c0_98] : memref<1x8x256xf32, #tpu.memory_space<vmem>>, vector<1x8x256xf32>
    %105 = vector.shape_cast %104 : vector<1x8x256xf32> to vector<8x256xf32>
    %106 = vector.shape_cast %103 : vector<8x256xf32> to vector<1x8x256xf32>
    tpu.vector_store %arg6[%c0_96, %c0_97, %c0_98], %106 {strides = array<i32>} : memref<1x8x256xf32, #tpu.memory_space<vmem>>, vector<1x8x256xf32>,
    return
  }
  func.func @transform_0(%arg0: i32) -> (i32, i32, i32) {
    %c0_i32 = arith.constant 0 : i32
    %c0_i32_0 = arith.constant 0 : i32
    %c0_i32_1 = arith.constant 0 : i32
    return %arg0, %c0_i32, %c0_i32_0 : i32, i32, i32
  }
  func.func @transform_1(%arg0: i32) -> (i32, i32) {
    %c0_i32 = arith.constant 0 : i32
    %c0_i32_0 = arith.constant 0 : i32
    %c0_i32_1 = arith.constant 0 : i32
    return %c0_i32, %c0_i32_0 : i32, i32
  }
  func.func @transform_2(%arg0: i32) -> (i32, i32) {
    %c0_i32 = arith.constant 0 : i32
    %c0_i32_0 = arith.constant 0 : i32
    %c0_i32_1 = arith.constant 0 : i32
    return %c0_i32, %c0_i32_0 : i32, i32
  }
  func.func @transform_3(%arg0: i32) -> (i32, i32) {
    %c0_i32 = arith.constant 0 : i32
    %c0_i32_0 = arith.constant 0 : i32
    %c0_i32_1 = arith.constant 0 : i32
    return %c0_i32, %c0_i32_0 : i32, i32
  }
  func.func @transform_4(%arg0: i32) -> (i32, i32) {
    %c0_i32 = arith.constant 0 : i32
    %c0_i32_0 = arith.constant 0 : i32
    %c0_i32_1 = arith.constant 0 : i32
    return %c0_i32, %c0_i32_0 : i32, i32
  }
  func.func @transform_5(%arg0: i32) -> (i32, i32, i32) {
    %c0_i32 = arith.constant 0 : i32
    %c0_i32_0 = arith.constant 0 : i32
    %c0_i32_1 = arith.constant 0 : i32
    return %arg0, %c0_i32, %c0_i32_0 : i32, i32, i32
  }
}

</mosaic_0001>

<bundles_post_ra>
// kernel: double_conv.1
= control target key start
LH: loop header
LB: loop body
LE: loop exit
PB: predicated region body
PF: predicated region fallthrough
CT: control target
= control target key end

     0   :  { %s2136_s18 = smov 0   ;;  %s2958_s0 = inlined_call_operand.vmem [shape: f32[2,8,256], index: 0, kind: input, shape index: {}]   ;;  %s2959_s1 = inlined_call_operand.vmem [shape: f32[8,72], index: 1, kind: input, shape index: {}]   ;;  %s2960_s2 = inlined_call_operand.vmem [shape: f32[8,1], index: 2, kind: input, shape index: {}]   ;;  %s2961_s3 = inlined_call_operand.vmem [shape: f32[8,72], index: 3, kind: input, shape index: {}]   ;;  %s2962_s4 = inlined_call_operand.vmem [shape: f32[8,1], index: 4, kind: input, shape index: {}]   ;;  %s2963_s5 = inlined_call_operand.vmem [shape: f32[2,8,256], index: 5, kind: output, shape index: {}]  }
   0x1 LB: > { %s2056_s19 = sadd.s32 4294967295, %s2094_s18   ;;  %p2060_p0 = scmp.ge.s32.totalorder %s2094_s18, 1  ;;  %s2094_s18 = sphi %s2136_s18, %s15_s18  }
   0x2   : > { %p187_p1 = scmp.lt.s32.totalorder %s2094_s18, 3 }
   0x4   : > { %p188_p2 = pnand %p2060_p0, %p187_p1 }
   0x5   : > { %p215_p3 = scmp.lt.s32.totalorder (!%p188_p2), %s2056_s19, 1  ;;  %s2097_s20 = smov (!%p188_p2), 111  }
   0x6   : > { %191 = sbr.rel (%p188_p2) target bundleno = 830 (0x33e), region = 40  ;;  %s2098_s25 = smov (!%p188_p2), 112  }
   0x7   : > { %s2099_s26 = smov (!%p188_p2), 113   ;;  %s2100_s27 = smov (!%p188_p2), 127  }
   0x8   : > { %s2101_s28 = smov (!%p188_p2), 1   ;;  %s2102_s29 = smov (!%p188_p2), 15  }
   0x9   : > { %s2103_s30 = smov (!%p188_p2), 16   ;;  %s2104_s6 = smov (!%p188_p2), 17  }
   0xb   : > { %v2096_v0 = vmov 0.0   ;;  %s3005_s19 = smov (!%p215_p3, %s2056_s19), 1  ;;  %v449_v3 = vld [vmem:[%s2960_s2] sm:$0xff]  ;;  %v2105_v4 = vmov 0   ;;  %v225_v5 = vlaneseq  ;;  %vm421_vm0 = vcmask 908288  }
   0xc   : > { %419 = vrot.lane.b32.xlu0 %v2096_v0, %s2097_s20  ;;  %541 = vmatprep.mubr.f32.mxu0 %v2096_v0  ;;  %s2067_s21 = sshll.u32 %s3005_s19, 4  ;;  %vm402_vm3 = vcmask 916480   ;;  %vm381_vm4 = vcmask 924672   ;;  %vm360_vm7 = vcmask 1039360   ;;  %vm335_vm8 = vcmask 7168  }
   0xd   : > { %707 = vmatprep.mubr.f32.mxu1 %v2096_v0  ;;  %s219_s24 = scalar_lea.vmem %s2958_s0, %s2067_s21  ;;  %2087 = vset.pattern.permute.xlu0 %v2105_v4  ;;  %v226_v6 = vand.u32 127, %v225_v5  ;;  %vm455_vm9 = vcmask 588800   ;;  %vm314_vm10 = vcmask 121856   ;;  %vm295_vm11 = vcmask 130048   ;;  %s224_s17 = scalar_lea.vmem %s2963_s5, %s2067_s21 }
   0xe   : > { %v2156_v1 = vld [vmem:[%s219_s24 + $0x8] sm:$0xff]  ;;  %v2158_v2 = vld [vmem:[%s219_s24] sm:$0xff]  ;;  %vm274_vm12 = vcmask 138240  }
   0xf   : > { %415 = vrot.lane.b32.xlu1 %v2158_v2, %s2097_s20  ;;  %v227_v7 = vadd.s32 128, %v226_v6  ;;  %v232_v10 = vand.u32 15, %v226_v6  ;;  %v2280_v45 = vand.u32 4294901760, %v2156_v1  ;;  %v2292_v52 = vand.u32 4294901760, %v2158_v2 }
  0x10   : > { %417 = vrot.lane.b32.xlu0 %v2156_v1, %s2097_s20 }
  0x11   : > { %v239_v9 = vand.u32 15, %v227_v7  ;;  %vm2225_vm2 = vcmp.le.s32.totalorder %v232_v10, 14  ;;  %vm2272_vm6 = vcmp.ge.s32.totalorder %v232_v10, 1  ;;  %v2303_v58 = vsub.f32 %v2156_v1, %v2280_v45 }
  0x12   : > { %v2316_v63 = vsub.f32 %v2158_v2, %v2292_v52 }
  0x13   : > { %398 = vrot.lane.b32.xlu1 %v2156_v1, %s2098_s25  ;;  %vm2221_vm1 = vcmp.le.s32.totalorder %v239_v9, 14  ;;  %vm2250_vm5 = vcmp.ge.s32.totalorder %v239_v9, 1 }
  0x14   : > { %400 = vrot.lane.b32.xlu0 %v2096_v0, %s2098_s25 }
  0x17   : > { %377 = vrot.lane.b32.xlu1 %v2156_v1, %s2099_s26 }
  0x18   : > { %379 = vrot.lane.b32.xlu0 %v2096_v0, %s2099_s26 }
  0x1b   : > { %396 = vrot.lane.b32.xlu1 %v2158_v2, %s2098_s25 }
  0x1c   : > { %375 = vrot.lane.b32.xlu0 %v2158_v2, %s2099_s26 }
  0x1f   : > { %356 = vrot.lane.b32.xlu1 %v2156_v1, %s2100_s27 }
  0x20   : > { %358 = vrot.lane.b32.xlu0 %v2096_v0, %s2100_s27 }
  0x23   : > { %354 = vrot.lane.b32.xlu1 %v2158_v2, %s2100_s27 }
  0x24   : > { %331 = vrot.lane.b32.xlu0 %v2158_v2, %s2101_s28 }
  0x27   : > { %333 = vrot.lane.b32.xlu1 %v2156_v1, %s2101_s28 }
  0x28   : > { %329 = vrot.lane.b32.xlu0 %v2096_v0, %s2101_s28 }
  0x2b   : > { %310 = vrot.lane.b32.xlu1 %v2158_v2, %s2102_s29 }
  0x2c   : > { %312 = vrot.lane.b32.xlu0 %v2156_v1, %s2102_s29 }
  0x2f   : > { %308 = vrot.lane.b32.xlu1 %v2096_v0, %s2102_s29 }
  0x30   : > { %291 = vrot.lane.b32.xlu0 %v2158_v2, %s2103_s30 }
  0x33   : > { %293 = vrot.lane.b32.xlu1 %v2156_v1, %s2103_s30 }
  0x34   : > { %270 = vrot.lane.b32.xlu0 %v2158_v2, %s2104_s6 }
  0x37   : > { %272 = vrot.lane.b32.xlu1 %v2156_v1, %s2104_s6 }
  0x38   : > { %289 = vrot.lane.b32.xlu0 %v2096_v0, %s2103_s30 }
  0x3b   : > { %268 = vrot.lane.b32.xlu1 %v2096_v0, %s2104_s6 }
  0x3c   : > { %452 = vperm.xlu0 %2087, %v449_v3  }
  0x3f   : > { %1286 = vrot.lane.b32.xlu1 %v2096_v0, %s2097_s20 }
  0x40   : > { %1268 = vrot.lane.b32.xlu0 %v2096_v0, %s2098_s25 }
  0x43   : > { %1180 = vrot.lane.b32.xlu1 %v2096_v0, %s2102_s29 }
  0x44   : > { %1248 = vrot.lane.b32.xlu0 %v2096_v0, %s2099_s26 }
  0x48   : > { %1228 = vrot.lane.b32.xlu0 %v2096_v0, %s2100_s27 }
  0x4c   : > { %1200 = vrot.lane.b32.xlu0 %v2096_v0, %s2101_s28 }
  0x7e   : > { %v420_v8 = vpop.permute.xlu0 %419 }
  0x81   : > { %v416_v14 = vpop.permute.xlu1 %415 }
  0x82   : > { %v418_v13 = vpop.permute.xlu0 %417 }
  0x83   : > { %v423_v15 = vsel %vm421_vm0, %v418_v13, %v420_v8  ;;  %v422_v16 = vsel %vm421_vm0, %v416_v14, %v418_v13  ;;  %v2969_v8 = vand.u32 4294901760, %v2303_v58 }
  0x84   : > { %v427_v17 = vsel %vm2221_vm1, %v423_v15, 0.0  ;;  %v426_v18 = vsel %vm2225_vm2, %v422_v16, 0.0  ;;  %v2968_v15 = vand.u32 4294901760, %v2316_v63 }
  0x85   : > { %v2235_v19 = vand.u32 4294901760, %v427_v17  ;;  %v2237_v20 = vand.u32 4294901760, %v426_v18  ;;  %v399_v22 = vpop.permute.xlu1 %398 }
  0x86   : > { %v401_v21 = vpop.permute.xlu0 %400 }
  0x87   : > { %v2240_v23 = vsub.f32 %v427_v17, %v2235_v19  ;;  %v2243_v24 = vsub.f32 %v426_v18, %v2237_v20  ;;  %v404_v25 = vsel %vm402_vm3, %v399_v22, %v401_v21  ;;  %474 = vmatprep.subr.mxu0 %v2235_v19 }
  0x88   : > { %v2247_v26 = vand.u32 4294901760, %v404_v25  ;;  %476 = vmatpush1.msra.mxu0 %v2237_v20 }
  0x89   : > { %v569_v28 = vand.u32 4294901760, %v2240_v23  ;;  %v575_v29 = vand.u32 4294901760, %v2243_v24  ;;  %v378_v32 = vpop.permute.xlu1 %377 }
  0x8a   : > { %v2257_v30 = vsub.f32 %v404_v25, %v2247_v26  ;;  %v380_v31 = vpop.permute.xlu0 %379  ;;  %478 = vmatprep.subr.mxu0 %v2247_v26 }
  0x8b   : > { %v383_v33 = vsel %vm381_vm4, %v378_v32, %v380_v31  ;;  %v570_v34 = vsub.f32 %v2240_v23, %v569_v28  ;;  %v576_v35 = vsub.f32 %v2243_v24, %v575_v29  ;;  %v618_v31 = vsub.f32 %v2303_v58, %v2969_v8 }
  0x8c   : > { %v387_v36 = vsel %vm2250_vm5, %v383_v33, 0.0  ;;  %v581_v37 = vand.u32 4294901760, %v2257_v30 }
  0x8d   : > { %v2270_v38 = vand.u32 4294901760, %v387_v36  ;;  %v571_v40 = vand.u32 4294901760, %v570_v34  ;;  %v577_v41 = vand.u32 4294901760, %v576_v35  ;;  %v397_v43 = vpop.permute.xlu1 %396 }
  0x8e   : > { %v376_v42 = vpop.permute.xlu0 %375  ;;  %v582_v44 = vsub.f32 %v2257_v30, %v581_v37  ;;  %v403_v48 = vsel %vm402_vm3, %v397_v43, %v399_v22 }
  0x8f   : > { %v2283_v46 = vsub.f32 %v387_v36, %v2270_v38  ;;  %v382_v47 = vsel %vm381_vm4, %v376_v42, %v378_v32  ;;  %572 = vmatprep.subr.mxu1 %v571_v40  ;;  %v2289_v50 = vand.u32 4294901760, %v403_v48  ;;  %v430_v32 = vld [vmem:[%s2959_s1] sm:$0xff]  ;;  %v624_v42 = vsub.f32 %v2316_v63, %v2968_v15 }
  0x90   : > { %v386_v49 = vsel %vm2272_vm6, %v382_v47, 0.0  ;;  %578 = vmatpush1.msra.mxu1 %v577_v41  ;;  %v583_v51 = vand.u32 4294901760, %v582_v44 }
  0x91   : > { %v2294_v53 = vand.u32 4294901760, %v386_v49  ;;  %v593_v54 = vand.u32 4294901760, %v2283_v46  ;;  %v2298_v55 = vsub.f32 %v403_v48, %v2289_v50  ;;  %480 = vmatpush1.msra.mxu0 %v2289_v50  ;;  %v357_v57 = vpop.permute.xlu1 %356  ;;  %v457_v48 = vsel %vm455_vm9, %v430_v32, 0 }
  0x92   : > { %v359_v56 = vpop.permute.xlu0 %358  ;;  %584 = vmatprep.subr.mxu1 %v583_v51  ;;  %482 = vmatprep.subr.mxu0 %v2270_v38 }
  0x93   : > { %v2306_v59 = vsub.f32 %v386_v49, %v2294_v53  ;;  %v362_v60 = vsel %vm360_vm7, %v357_v57, %v359_v56  ;;  %484 = vmatpush1.msra.mxu0 %v2294_v53  ;;  %v587_v62 = vand.u32 4294901760, %v2298_v55  ;;  %v594_v3 = vsub.f32 %v2283_v46, %v593_v54 }
  0x94   : > { %v366_v61 = vsel %vm2221_vm1, %v362_v60, 0.0 }
  0x95   : > { %v2318_v1 = vand.u32 4294901760, %v366_v61  ;;  %v599_v4 = vand.u32 4294901760, %v2306_v59  ;;  %v355_v6 = vpop.permute.xlu1 %354  ;;  %v588_v7 = vsub.f32 %v2298_v55, %v587_v62  ;;  %v595_v17 = vand.u32 4294901760, %v594_v3 }
  0x96   : > { %v332_v5 = vpop.permute.xlu0 %331  ;;  %v361_v2 = vsel %vm360_vm7, %v355_v6, %v357_v57  ;;  %v619_v6 = vand.u32 4294901760, %v618_v31 }
  0x97   : > { %v2329_v9 = vsub.f32 %v366_v61, %v2318_v1  ;;  %486 = vmatprep.subr.mxu0 %v2318_v1  ;;  %v600_v10 = vsub.f32 %v2306_v59, %v599_v4  ;;  %v365_v13 = vsel %vm2225_vm2, %v361_v2, 0.0  ;;  %v589_v14 = vand.u32 4294901760, %v588_v7 }
  0x98   : > { %v2339_v16 = vand.u32 4294901760, %v365_v13  ;;  %v625_v7 = vand.u32 4294901760, %v624_v42  ;;  %v2386_v2 = vand.u32 4294901760, %v457_v48 }
  0x99   : > { %v601_v18 = vand.u32 4294901760, %v600_v10  ;;  %v605_v21 = vand.u32 4294901760, %v2329_v9  ;;  %590 = vmatpush1.msra.mxu1 %v589_v14  ;;  %v334_v25 = vpop.permute.xlu1 %333 }
  0x9a   : > { %v330_v22 = vpop.permute.xlu0 %329  ;;  %v2349_v33 = vsub.f32 %v365_v13, %v2339_v16  ;;  %v337_v35 = vsel %vm335_vm8, %v332_v5, %v334_v25  ;;  %488 = vmatpush1.msra.mxu0 %v2339_v16  ;;  %596 = vmatprep.subr.mxu1 %v595_v17 }
  0x9b   : > { %v336_v34 = vsel %vm335_vm8, %v330_v22, %v332_v5  ;;  %v341_v40 = vsel %vm2250_vm5, %v337_v35, 0.0  ;;  %602 = vmatpush1.msra.mxu1 %v601_v18  ;;  %490 = vmatprep.subr.mxu0 %v2280_v45  ;;  %v606_v41 = vsub.f32 %v2329_v9, %v605_v21 }
  0x9c   : > { %v340_v36 = vsel %vm2272_vm6, %v336_v34, 0.0  ;;  %v2367_v44 = vand.u32 4294901760, %v341_v40  ;;  %492 = vmatpush1.msra.mxu0 %v2292_v52  ;;  %v611_v47 = vand.u32 4294901760, %v2349_v33 }
  0x9d   : > { %v2365_v43 = vand.u32 4294901760, %v340_v36  ;;  %v311_v51 = vpop.permute.xlu1 %310  ;;  %v607_v56 = vand.u32 4294901760, %v606_v41 }
  0x9e   : > { %v313_v49 = vpop.permute.xlu0 %312  ;;  %v2376_v60 = vsub.f32 %v341_v40, %v2367_v44  ;;  %494 = vmatprep.subr.mxu0 %v2367_v44  ;;  %v612_v3 = vsub.f32 %v2349_v33, %v611_v47 }
  0x9f   : > { %v2373_v57 = vsub.f32 %v340_v36, %v2365_v43  ;;  %v316_v61 = vsel %vm314_vm10, %v311_v51, %v313_v49  ;;  %608 = vmatprep.subr.mxu1 %v607_v56  ;;  %496 = vmatpush1.msra.mxu0 %v2365_v43  ;;  %v2406_v36 = vsub.f32 %v457_v48, %v2386_v2 }
  0xa0   : > { %v320_v5 = vsel %vm2221_vm1, %v316_v61, 0.0  ;;  %v613_v13 = vand.u32 4294901760, %v612_v3  ;;  %v2967_v14 = vand.u32 4294901760, %v2376_v60 }
  0xa1   : > { %v2388_v10 = vand.u32 4294901760, %v320_v5  ;;  %v2966_v17 = vand.u32 4294901760, %v2373_v57  ;;  %v309_v22 = vpop.permute.xlu1 %308 }
  0xa2   : > { %v292_v18 = vpop.permute.xlu0 %291  ;;  %v315_v32 = vsel %vm314_vm10, %v309_v22, %v311_v51  ;;  %614 = vmatpush1.msra.mxu1 %v613_v13  ;;  %v630_v31 = vsub.f32 %v2376_v60, %v2967_v14 }
  0xa3   : > { %v2393_v25 = vsub.f32 %v320_v5, %v2388_v10  ;;  %498 = vmatprep.subr.mxu0 %v2388_v10  ;;  %v319_v34 = vsel %vm2225_vm2, %v315_v32, 0.0  ;;  %620 = vmatprep.subr.mxu1 %v619_v6  ;;  %v636_v35 = vsub.f32 %v2373_v57, %v2966_v17  ;;  %v544_v6 = vand.u32 4294901760, %v2406_v36 }
  0xa4   : > { %v2408_v40 = vand.u32 4294901760, %v319_v34  ;;  %626 = vmatpush1.msra.mxu1 %v625_v7  ;;  %v631_v41 = vand.u32 4294901760, %v630_v31 }
  0xa5   : > { %v2964_v42 = vand.u32 4294901760, %v2393_v25  ;;  %v294_v51 = vpop.permute.xlu1 %293  ;;  %v637_v56 = vand.u32 4294901760, %v636_v35 }
  0xa6   : > { %v271_v49 = vpop.permute.xlu0 %270  ;;  %v2412_v61 = vsub.f32 %v319_v34, %v2408_v40  ;;  %v297_v3 = vsel %vm295_vm11, %v292_v18, %v294_v51  ;;  %500 = vmatpush1.msra.mxu0 %v2408_v40  ;;  %632 = vmatprep.subr.mxu1 %v631_v41 }
  0xa7   : > { %v642_v48 = vsub.f32 %v2393_v25, %v2964_v42  ;;  %v2419_v5 = vand.u32 4294901760, %v297_v3  ;;  %638 = vmatpush1.msra.mxu1 %v637_v56 }
  0xa8   : > { %v2965_v13 = vand.u32 4294901760, %v2412_v61 }
  0xa9   : > { %v643_v7 = vand.u32 4294901760, %v642_v48  ;;  %v2424_v22 = vsub.f32 %v297_v3, %v2419_v5  ;;  %v273_v31 = vpop.permute.xlu1 %272  ;;  %502 = vmatprep.subr.mxu0 %v2419_v5  ;;  %v545_v48 = vsub.f32 %v2406_v36, %v544_v6 }
  0xaa   : > { %v290_v32 = vpop.permute.xlu0 %289  ;;  %v276_v35 = vsel %vm274_vm12, %v271_v49, %v273_v31  ;;  %v648_v41 = vsub.f32 %v2412_v61, %v2965_v13 }
  0xab   : > { %v296_v34 = vsel %vm295_vm11, %v290_v32, %v292_v18  ;;  %644 = vmatprep.subr.mxu1 %v643_v7  ;;  %v280_v56 = vsel %vm2250_vm5, %v276_v35, 0.0  ;;  %v653_v3 = vand.u32 4294901760, %v2424_v22  ;;  %v546_v17 = vand.u32 4294901760, %v545_v48 }
  0xac   : > { %v2432_v51 = vand.u32 4294901760, %v296_v34  ;;  %v2440_v42 = vand.u32 4294901760, %v280_v56  ;;  %v649_v18 = vand.u32 4294901760, %v648_v41 }
  0xad   : > { %v269_v32 = vpop.permute.xlu1 %268  ;;  %v654_v31 = vsub.f32 %v2424_v22, %v653_v3 }
  0xae   : > { %v2443_v7 = vsub.f32 %v296_v34, %v2432_v51  ;;  %504 = vmatpush1.msra.mxu0 %v2432_v51  ;;  %v2450_v35 = vsub.f32 %v280_v56, %v2440_v42  ;;  %v275_v13 = vsel %vm274_vm12, %v269_v32, %v271_v49  ;;  %650 = vmatpush1.msra.mxu1 %v649_v18 }
  0xaf   : > { %506 = vmatprep.subr.mxu0 %v2440_v42  ;;  %v279_v41 = vsel %vm2272_vm6, %v275_v13, 0.0  ;;  %v655_v34 = vand.u32 4294901760, %v654_v31 }
  0xb0   : > { %v659_v14 = vand.u32 4294901760, %v2443_v7  ;;  %v2457_v15 = vand.u32 4294901760, %v279_v41  ;;  %v665_v8 = vand.u32 4294901760, %v2450_v35 }
  0xb1   : > { %656 = vmatprep.subr.mxu1 %v655_v34 }
  0xb2   : > { %v660_v56 = vsub.f32 %v2443_v7, %v659_v14  ;;  %v2464_v49 = vsub.f32 %v279_v41, %v2457_v15  ;;  %508 = vmatpush1.msra.mxu0 %v2457_v15  ;;  %v666_v13 = vsub.f32 %v2450_v35, %v665_v8 }
  0xb3   : > { %731 = vmatprep.subr.mxu0 %v2240_v23  ;;  %547 = vmatmul.mubr.f32.vlgmr.msra.gmra.mxu0 %v546_v17  ;;  %v2988_v23 = vand.u32 4294901760, %v2303_v58 }
  0xb4   : > { %v661_v48 = vand.u32 4294901760, %v660_v56  ;;  %734 = vmatpush1.msra.mxu0 %v2243_v24  ;;  %v667_v18 = vand.u32 4294901760, %v666_v13  ;;  %v671_v32 = vand.u32 4294901760, %v2464_v49  ;;  %815 = vmatprep.mubr.f32.mxu0 %v2096_v0  ;;  %v2989_v24 = vand.u32 4294901760, %v2316_v63 }
  0xb5   : > { %737 = vmatprep.subr.mxu0 %v2257_v30  ;;  %v2992_v30 = vand.u32 4294901760, %v2393_v25 }
  0xb6   : > { %662 = vmatpush1.msra.mxu1 %v661_v48  ;;  %740 = vmatpush1.msra.mxu0 %v2298_v55  ;;  %v672_v31 = vsub.f32 %v2464_v49, %v671_v32 }
  0xb7   : > { %668 = vmatprep.subr.mxu1 %v667_v18  ;;  %743 = vmatprep.subr.mxu0 %v2283_v46 }
  0xb8   : > { %746 = vmatpush1.msra.mxu0 %v2306_v59  ;;  %v673_v17 = vand.u32 4294901760, %v672_v31 }
  0xb9   : > { %749 = vmatprep.subr.mxu0 %v2329_v9 }
  0xba   : > { %674 = vmatpush1.msra.mxu1 %v673_v17  ;;  %752 = vmatpush1.msra.mxu0 %v2349_v33 }
  0xbb   : > { %709 = vmatmul.mubr.f32.vlgmr.msra.gmra.mxu1 %v2386_v2  ;;  %755 = vmatprep.subr.mxu0 %v2303_v58 }
  0xbc   : > { %839 = vmatprep.subr.mxu1 %v2235_v19  ;;  %758 = vmatpush1.msra.mxu0 %v2316_v63 }
  0xbd   : > { %841 = vmatpush1.msra.mxu1 %v2237_v20  ;;  %761 = vmatprep.subr.mxu0 %v2376_v60 }
  0xbe   : > { %843 = vmatprep.subr.mxu1 %v2247_v26  ;;  %764 = vmatpush1.msra.mxu0 %v2373_v57 }
  0xbf   : > { %845 = vmatpush1.msra.mxu1 %v2289_v50  ;;  %767 = vmatprep.subr.mxu0 %v2393_v25  ;;  %v1287_v25 = vpop.permute.xlu1 %1286 }
  0xc0   : > { %847 = vmatprep.subr.mxu1 %v2270_v38  ;;  %770 = vmatpush1.msra.mxu0 %v2412_v61 }
  0xc1   : > { %849 = vmatpush1.msra.mxu1 %v2294_v53  ;;  %773 = vmatprep.subr.mxu0 %v2424_v22 }
  0xc2   : > { %851 = vmatprep.subr.mxu1 %v2318_v1  ;;  %776 = vmatpush1.msra.mxu0 %v2443_v7 }
  0xc3   : > { %853 = vmatpush1.msra.mxu1 %v2339_v16  ;;  %779 = vmatprep.subr.mxu0 %v2450_v35 }
  0xc4   : > { %855 = vmatprep.subr.mxu1 %v2280_v45  ;;  %782 = vmatpush1.msra.mxu0 %v2464_v49 }
  0xc5   : > { %857 = vmatpush1.msra.mxu1 %v2292_v52  ;;  %818 = vmatmul.mubr.f32.vlgmr.msra.gmra.mxu0 %v2406_v36 }
  0xc6   : > { %859 = vmatprep.subr.mxu1 %v2367_v44  ;;  %933 = vmatprep.subr.mxu0 %v569_v28  ;;  %v2990_v28 = vand.u32 4294901760, %v2376_v60  ;;  %v1315_v60 = vld [vmem:[%s2962_s4] sm:$0xff] }
  0xc7   : > { %861 = vmatpush1.msra.mxu1 %v2365_v43  ;;  %937 = vmatpush1.msra.mxu0 %v575_v29  ;;  %v2991_v29 = vand.u32 4294901760, %v2373_v57 }
  0xc8   : > { %863 = vmatprep.subr.mxu1 %v2388_v10  ;;  %941 = vmatprep.subr.mxu0 %v581_v37 }
  0xc9   : > { %865 = vmatpush1.msra.mxu1 %v2408_v40  ;;  %945 = vmatpush1.msra.mxu0 %v587_v62 }
  0xca   : > { %867 = vmatprep.subr.mxu1 %v2419_v5  ;;  %949 = vmatprep.subr.mxu0 %v593_v54 }
  0xcb   : > { %869 = vmatpush1.msra.mxu1 %v2432_v51  ;;  %953 = vmatpush1.msra.mxu0 %v599_v4 }
  0xcc   : > { %871 = vmatprep.subr.mxu1 %v2440_v42  ;;  %957 = vmatprep.subr.mxu0 %v605_v21 }
  0xcd   : > { %873 = vmatpush1.msra.mxu1 %v2457_v15  ;;  %906 = vmatprep.mubr.f32.mxu1 %v2096_v0 }
  0xce   : > { %961 = vmatpush1.msra.mxu0 %v611_v47  ;;  %910 = vmatmul.mubr.f32.vlgmr.msra.gmra.mxu1 %v544_v6 }
  0xcf   : > { %965 = vmatprep.subr.mxu0 %v2988_v23  ;;  %1057 = vmatprep.subr.mxu1 %v2235_v19  ;;  %v2993_v19 = vand.u32 4294901760, %v2412_v61 }
  0xd0   : > { %969 = vmatpush1.msra.mxu0 %v2989_v24  ;;  %1059 = vmatpush1.msra.mxu1 %v2237_v20 }
  0xd1   : > { %973 = vmatprep.subr.mxu0 %v2990_v28  ;;  %1061 = vmatprep.subr.mxu1 %v2247_v26  ;;  %v453_v26 = vpop.permute.xlu0 %452 }
  0xd2   : > { %977 = vmatpush1.msra.mxu0 %v2991_v29  ;;  %1063 = vmatpush1.msra.mxu1 %v2289_v50 }
  0xd3   : > { %981 = vmatprep.subr.mxu0 %v2992_v30  ;;  %1065 = vmatprep.subr.mxu1 %v2270_v38 }
  0xd4   : > { %985 = vmatpush1.msra.mxu0 %v2993_v19  ;;  %1067 = vmatpush1.msra.mxu1 %v2294_v53 }
  0xd5   : > { %989 = vmatprep.subr.mxu0 %v653_v3  ;;  %1069 = vmatprep.subr.mxu1 %v2318_v1  ;;  %v1296_v3 = vld [vmem:[%s2961_s3] sm:$0xff] }
  0xd6   : > { %993 = vmatpush1.msra.mxu0 %v659_v14  ;;  %1071 = vmatpush1.msra.mxu1 %v2339_v16  ;;  %v1322_v41 = vsel %vm455_vm9, %v1296_v3, 0 }
  0xd7   : > { %997 = vmatprep.subr.mxu0 %v665_v8  ;;  %1073 = vmatprep.subr.mxu1 %v2280_v45  ;;  %v2626_v17 = vand.u32 4294901760, %v1322_v41 }
  0xd8   : > { %1001 = vmatpush1.msra.mxu0 %v671_v32  ;;  %1034 = vmatprep.mubr.f32.mxu0 %v2096_v0 }
  0xd9   : > { %1075 = vmatpush1.msra.mxu1 %v2292_v52  ;;  %1036 = vmatmul.mubr.f32.vlgmr.msra.gmra.mxu0 %v2386_v2 }
  0xda   : > { %1077 = vmatprep.subr.mxu1 %v2367_v44  ;;  %1124 = vmatprep.mubr.f32.mxu1 %v2096_v0 }
  0xdb   : > { %1079 = vmatpush1.msra.mxu1 %v2365_v43  ;;  %1406 = vmatprep.mubr.f32.mxu0 %v2096_v0 }
  0xdc   : > { %1081 = vmatprep.subr.mxu1 %v2388_v10 }
  0xdd   : > { %1083 = vmatpush1.msra.mxu1 %v2408_v40  ;;  %v1181_v40 = vpop.permute.xlu1 %1180 }
  0xde   : > { %1085 = vmatprep.subr.mxu1 %v2419_v5 }
  0xdf   : > { %1087 = vmatpush1.msra.mxu1 %v2432_v51 }
  0xe0   : > { %1089 = vmatprep.subr.mxu1 %v2440_v42 }
  0xe1   : > { %1091 = vmatpush1.msra.mxu1 %v2457_v15 }
  0xe2   : > { %1126 = vmatmul.mubr.f32.vlgmr.msra.gmra.mxu1 %v2386_v2  ;;  %v1269_v2 = vpop.permute.xlu0 %1268 }
  0xe3   : > { %1572 = vmatprep.mubr.f32.mxu1 %v2096_v0 }
  0xe6   : > { %v1249_v10 = vpop.permute.xlu0 %1248 }
  0xea   : > { %v2599_v14 = vpop.permute.xlu0 %1228 }
  0xee   : > { %v1201_v36 = vpop.permute.xlu0 %1200 }
 0x173   : > { %v548_v20 = vpop.f32.mrf.mxu0 }
 0x174   : > { %v549_v45 = vadd.f32 %v548_v20, %v453_v26 }
 0x175   : > { %v550_v37 = vpop.f32.mrf.mxu0 }
 0x176   : > { %v551_v63 = vadd.f32 %v550_v37, %v453_v26 }
 0x17b   : > { %v710_v38 = vpop.f32.mrf.mxu1 }
 0x17c   : > { %v711_v52 = vadd.f32 %v710_v38, %v549_v45 }
 0x17d   : > { %v712_v50 = vpop.f32.mrf.mxu1 }
 0x17e   : > { %v713_v9 = vadd.f32 %v712_v50, %v551_v63 }
 0x185   : > { %v819_v46 = vpop.f32.mrf.mxu0 }
 0x186   : > { %v820_v55 = vadd.f32 %v819_v46, %v711_v52 }
 0x187   : > { %v821_v53 = vpop.f32.mrf.mxu0 }
 0x188   : > { %v822_v16 = vadd.f32 %v821_v53, %v713_v9 }
 0x18e   : > { %v911_v54 = vpop.f32.mrf.mxu1 }
 0x18f   : > { %v912_v59 = vadd.f32 %v911_v54, %v820_v55 }
 0x190   : > { %v913_v62 = vpop.f32.mrf.mxu1 }
 0x191   : > { %v914_v33 = vadd.f32 %v913_v62, %v822_v16 }
 0x199   : > { %v1037_v58 = vpop.f32.mrf.mxu0 }
 0x19a   : > { %v1038_v1 = vadd.f32 %v1037_v58, %v912_v59  ;;  %v2660_v58 = vsub.f32 %v1322_v41, %v2626_v17 }
 0x19b   : > { %v1039_v21 = vpop.f32.mrf.mxu0 }
 0x19c   : > { %v1040_v44 = vadd.f32 %v1039_v21, %v914_v33 }
 0x1a2   : > { %v1127_v4 = vpop.f32.mrf.mxu1 }
 0x1a3   : > { %v1128_v8 = vadd.f32 %v1127_v4, %v1038_v1 }
 0x1a4   : > { %v1129_v43 = vpop.f32.mrf.mxu1 }
 0x1a5   : > { %v1132_v15 = vmax.f32 %v1128_v8, 0.0  ;;  %v1130_v47 = vadd.f32 %v1129_v43, %v1040_v44 }
 0x1a7   : > { %1264 = vrot.lane.b32.xlu1 %v1132_v15, %s2098_s25  ;;  %1282 = vrot.lane.b32.xlu0 %v1132_v15, %s2097_s20  ;;  %v1133_v57 = vmax.f32 %v1130_v47, 0.0  ;;  %v2608_v7 = vand.u32 4294901760, %v1132_v15 }
 0x1a9   : > { %v2610_v35 = vand.u32 4294901760, %v1133_v57  ;;  %v2624_v31 = vsub.f32 %v1132_v15, %v2608_v7 }
 0x1ab   : > { %1224 = vrot.lane.b32.xlu1 %v1132_v15, %s2100_s27  ;;  %1244 = vrot.lane.b32.xlu0 %v1132_v15, %s2099_s26  ;;  %v2633_v28 = vsub.f32 %v1133_v57, %v2610_v35  ;;  %v2970_v52 = vand.u32 4294901760, %v2624_v31 }
 0x1ad   : > { %v2974_v55 = vand.u32 4294901760, %v2633_v28 }
 0x1af   : > { %1182 = vrot.lane.b32.xlu1 %v1132_v15, %s2102_s29  ;;  %1202 = vrot.lane.b32.xlu0 %v1132_v15, %s2101_s28 }
 0x1b3   : > { %1284 = vrot.lane.b32.xlu1 %v1133_v57, %s2097_s20  ;;  %1164 = vrot.lane.b32.xlu0 %v1132_v15, %s2103_s30 }
 0x1b7   : > { %1266 = vrot.lane.b32.xlu1 %v1133_v57, %s2098_s25  ;;  %1144 = vrot.lane.b32.xlu0 %v1132_v15, %s2104_s6 }
 0x1bb   : > { %1246 = vrot.lane.b32.xlu1 %v1133_v57, %s2099_s26  ;;  %1184 = vrot.lane.b32.xlu0 %v1133_v57, %s2102_s29 }
 0x1bf   : > { %1226 = vrot.lane.b32.xlu1 %v1133_v57, %s2100_s27  ;;  %1162 = vrot.lane.b32.xlu0 %v2096_v0, %s2103_s30 }
 0x1c3   : > { %1204 = vrot.lane.b32.xlu1 %v1133_v57, %s2101_s28  ;;  %1318 = vperm.xlu0 %2087, %v1315_v60  }
 0x1c7   : > { %1166 = vrot.lane.b32.xlu1 %v1133_v57, %s2103_s30 }
 0x1cb   : > { %1146 = vrot.lane.b32.xlu1 %v1133_v57, %s2104_s6 }
 0x1cf   : > { %1142 = vrot.lane.b32.xlu1 %v2096_v0, %s2104_s6 }
 0x219   : > { %v1265_v42 = vpop.permute.xlu1 %1264  ;;  %v1283_v61 = vpop.permute.xlu0 %1282 }
 0x21d   : > { %v2601_v5 = vpop.permute.xlu1 %1224  ;;  %v1245_v6 = vpop.permute.xlu0 %1244 }
 0x221   : > { %v1183_v22 = vpop.permute.xlu1 %1182  ;;  %v2603_v51 = vpop.permute.xlu0 %1202 }
 0x222   : > { %v1206_v49 = vsel %vm335_vm8, %v1201_v36, %v2603_v51  ;;  %v1186_v29 = vsel %vm314_vm10, %v1181_v40, %v1183_v22 }
 0x223   : > { %v1210_v30 = vsel %vm2272_vm6, %v1206_v49, 0.0  ;;  %v1190_v53 = vsel %vm2225_vm2, %v1186_v29, 0.0 }
 0x224   : > { %v2662_v59 = vand.u32 4294901760, %v1210_v30 }
 0x225   : > { %v1285_v34 = vpop.permute.xlu1 %1284  ;;  %v2613_v56 = vpop.permute.xlu0 %1164 }
 0x226   : > { %v1288_v13 = vsel %vm421_vm0, %v1283_v61, %v1285_v34  ;;  %v1289_v48 = vsel %vm421_vm0, %v1285_v34, %v1287_v25  ;;  %v2692_v25 = vand.u32 4294901760, %v1190_v53  ;;  %v2695_v36 = vsub.f32 %v1210_v30, %v2662_v59 }
 0x227   : > { %v1292_v18 = vsel %vm2225_vm2, %v1288_v13, 0.0  ;;  %v1293_v32 = vsel %vm2221_vm1, %v1289_v48, 0.0 }
 0x228   : > { %v2628_v23 = vand.u32 4294901760, %v1293_v32  ;;  %v2630_v24 = vand.u32 4294901760, %v1292_v18 }
 0x229   : > { %v1267_v19 = vpop.permute.xlu1 %1266  ;;  %v2638_v20 = vpop.permute.xlu0 %1144 }
 0x22a   : > { %v2641_v26 = vsub.f32 %v1293_v32, %v2628_v23  ;;  %v2644_v37 = vsub.f32 %v1292_v18, %v2630_v24  ;;  %v1270_v38 = vsel %vm402_vm3, %v1265_v42, %v1267_v19  ;;  %v1271_v45 = vsel %vm402_vm3, %v1267_v19, %v1269_v2  ;;  %1339 = vmatprep.subr.mxu0 %v2628_v23 }
 0x22b   : > { %v2649_v46 = vand.u32 4294901760, %v1271_v45  ;;  %v2651_v50 = vand.u32 4294901760, %v1270_v38  ;;  %1341 = vmatpush1.msra.mxu0 %v2630_v24 }
 0x22c   : > { %v1434_v54 = vand.u32 4294901760, %v2641_v26  ;;  %v1440_v62 = vand.u32 4294901760, %v2644_v37 }
 0x22d   : > { %v2666_v63 = vsub.f32 %v1271_v45, %v2649_v46  ;;  %v2669_v1 = vsub.f32 %v1270_v38, %v2651_v50  ;;  %v1247_v4 = vpop.permute.xlu1 %1246  ;;  %1343 = vmatprep.subr.mxu0 %v2649_v46  ;;  %v1185_v8 = vpop.permute.xlu0 %1184 }
 0x22e   : > { %v1250_v9 = vsel %vm381_vm4, %v1245_v6, %v1247_v4  ;;  %v1251_v15 = vsel %vm381_vm4, %v1247_v4, %v1249_v10  ;;  %v1187_v16 = vsel %vm314_vm10, %v1183_v22, %v1185_v8  ;;  %1345 = vmatpush1.msra.mxu0 %v2651_v50  ;;  %v1435_v21 = vsub.f32 %v2641_v26, %v1434_v54 }
 0x22f   : > { %v1452_v33 = vand.u32 4294901760, %v2669_v1  ;;  %v1254_v43 = vsel %vm2272_vm6, %v1250_v9, 0.0  ;;  %v1255_v44 = vsel %vm2250_vm5, %v1251_v15, 0.0  ;;  %v1191_v47 = vsel %vm2221_vm1, %v1187_v16, 0.0 }
 0x230   : > { %v2686_v57 = vand.u32 4294901760, %v1255_v44  ;;  %v2688_v60 = vand.u32 4294901760, %v1254_v43  ;;  %v2690_v2 = vand.u32 4294901760, %v1191_v47  ;;  %v1436_v10 = vand.u32 4294901760, %v1435_v21 }
 0x231   : > { %v1227_v40 = vpop.permute.xlu1 %1226  ;;  %v1163_v42 = vpop.permute.xlu0 %1162  ;;  %v1441_v61 = vsub.f32 %v2644_v37, %v1440_v62  ;;  %v1446_v6 = vand.u32 4294901760, %v2666_v63  ;;  %v1453_v22 = vsub.f32 %v2669_v1, %v1452_v33 }
 0x232   : > { %v2705_v3 = vsub.f32 %v1255_v44, %v2686_v57  ;;  %v2708_v41 = vsub.f32 %v1254_v43, %v2688_v60  ;;  %v1230_v34 = vsel %vm360_vm7, %v2601_v5, %v1227_v40  ;;  %1347 = vmatprep.subr.mxu0 %v2686_v57  ;;  %v1231_v49 = vsel %vm360_vm7, %v1227_v40, %v2599_v14 }
 0x233   : > { %v1234_v13 = vsel %vm2225_vm2, %v1230_v34, 0.0  ;;  %v1168_v48 = vsel %vm295_vm11, %v1163_v42, %v2613_v56  ;;  %1437 = vmatprep.subr.mxu1 %v1436_v10  ;;  %1349 = vmatpush1.msra.mxu0 %v2688_v60  ;;  %v1442_v18 = vand.u32 4294901760, %v1441_v61  ;;  %v2722_v29 = vsub.f32 %v1191_v47, %v2690_v2 }
 0x234   : > { %v1464_v32 = vand.u32 4294901760, %v2708_v41  ;;  %v1235_v5 = vsel %vm2221_vm1, %v1231_v49, 0.0  ;;  %v2726_v30 = vand.u32 4294901760, %v1234_v13  ;;  %v2730_v12 = vand.u32 4294901760, %v1168_v48 }
 0x235   : > { %v2728_v14 = vand.u32 4294901760, %v1235_v5  ;;  %1443 = vmatpush1.msra.mxu1 %v1442_v18  ;;  %v1205_v19 = vpop.permute.xlu1 %1204  ;;  %v1447_v38 = vsub.f32 %v2666_v63, %v1446_v6  ;;  %v1458_v45 = vand.u32 4294901760, %v2705_v3  ;;  %v1454_v8 = vand.u32 4294901760, %v1453_v22 }
 0x236   : > { %v2737_v4 = vsub.f32 %v1234_v13, %v2726_v30  ;;  %v1207_v11 = vsel %vm335_vm8, %v2603_v51, %v1205_v19  ;;  %v1465_v9 = vsub.f32 %v2708_v41, %v1464_v32  ;;  %v2754_v51 = vsub.f32 %v1190_v53, %v2692_v25 }
 0x237   : > { %v2745_v15 = vsub.f32 %v1235_v5, %v2728_v14  ;;  %v1211_v16 = vsel %vm2250_vm5, %v1207_v11, 0.0  ;;  %v1448_v21 = vand.u32 4294901760, %v1447_v38  ;;  %1351 = vmatprep.subr.mxu0 %v2728_v14  ;;  %v1459_v43 = vsub.f32 %v2705_v3, %v1458_v45 }
 0x238   : > { %v2978_v44 = vand.u32 4294901760, %v2737_v4  ;;  %v2757_v47 = vand.u32 4294901760, %v1211_v16  ;;  %1353 = vmatpush1.msra.mxu0 %v2726_v30  ;;  %v1466_v10 = vand.u32 4294901760, %v1465_v9  ;;  %v1483_v22 = vsub.f32 %v2633_v28, %v2974_v55 }
 0x239   : > { %1449 = vmatprep.subr.mxu1 %v1448_v21  ;;  %1355 = vmatprep.subr.mxu0 %v2610_v35  ;;  %v1167_v40 = vpop.permute.xlu1 %1166  ;;  %v1460_v42 = vand.u32 4294901760, %v1459_v43  ;;  %v1470_v61 = vand.u32 4294901760, %v2745_v15  ;;  %v2975_v53 = vand.u32 4294901760, %v2660_v58  ;;  %v2972_v34 = vand.u32 4294901760, %v2695_v36 }
 0x23a   : > { %v2768_v49 = vsub.f32 %v1168_v48, %v2730_v12  ;;  %v2771_v13 = vsub.f32 %v1211_v16, %v2757_v47  ;;  %1455 = vmatpush1.msra.mxu1 %v1454_v8  ;;  %v1169_v18 = vsel %vm295_vm11, %v2613_v56, %v1167_v40  ;;  %1357 = vmatpush1.msra.mxu0 %v2608_v7  ;;  %v2973_v38 = vand.u32 4294901760, %v2722_v29 }
 0x23b   : > { %v2776_v5 = vand.u32 4294901760, %v1169_v18  ;;  %1359 = vmatprep.subr.mxu0 %v2757_v47  ;;  %1461 = vmatprep.subr.mxu1 %v1460_v42  ;;  %v1471_v19 = vsub.f32 %v2745_v15, %v1470_v61  ;;  %v1477_v48 = vsub.f32 %v2737_v4, %v2978_v44  ;;  %v2977_v11 = vand.u32 4294901760, %v2754_v51 }
 0x23c   : > { %1361 = vmatpush1.msra.mxu0 %v2662_v59  ;;  %1467 = vmatpush1.msra.mxu1 %v1466_v10  ;;  %v1489_v56 = vsub.f32 %v2624_v31, %v2970_v52  ;;  %v2971_v8 = vand.u32 4294901760, %v2771_v13  ;;  %v1484_v40 = vand.u32 4294901760, %v1483_v22  ;;  %v2979_v42 = vand.u32 4294901760, %v2768_v49 }
 0x23d   : > { %v2793_v9 = vsub.f32 %v1169_v18, %v2776_v5  ;;  %1363 = vmatprep.subr.mxu0 %v2690_v2  ;;  %v1147_v16 = vpop.permute.xlu1 %1146  ;;  %v1472_v21 = vand.u32 4294901760, %v1471_v19  ;;  %v1478_v43 = vand.u32 4294901760, %v1477_v48  ;;  %v1501_v18 = vsub.f32 %v2695_v36, %v2972_v34 }
 0x23e   : > { %v1149_v10 = vsel %vm274_vm12, %v2638_v20, %v1147_v16  ;;  %1365 = vmatpush1.msra.mxu0 %v2692_v25  ;;  %v1495_v52 = vsub.f32 %v2771_v13, %v2971_v8  ;;  %v1507_v22 = vsub.f32 %v2722_v29, %v2973_v38  ;;  %v1410_v16 = vsub.f32 %v2660_v58, %v2975_v53 }
 0x23f   : > { %v1153_v19 = vsel %vm2250_vm5, %v1149_v10, 0.0  ;;  %1473 = vmatprep.subr.mxu1 %v1472_v21  ;;  %1367 = vmatprep.subr.mxu0 %v2776_v5  ;;  %v2976_v48 = vand.u32 4294901760, %v2793_v9  ;;  %v1490_v27 = vand.u32 4294901760, %v1489_v56  ;;  %v1513_v21 = vsub.f32 %v2754_v51, %v2977_v11 }
 0x240   : > { %v2816_v8 = vand.u32 4294901760, %v1153_v19  ;;  %1369 = vmatpush1.msra.mxu0 %v2730_v12  ;;  %1479 = vmatpush1.msra.mxu1 %v1478_v43  ;;  %v1496_v10 = vand.u32 4294901760, %v1495_v52  ;;  %v1525_v55 = vsub.f32 %v2768_v49, %v2979_v42  ;;  %v1502_v56 = vand.u32 4294901760, %v1501_v18 }
 0x241   : > { %1485 = vmatprep.subr.mxu1 %v1484_v40  ;;  %v1143_v34 = vpop.permute.xlu1 %1142  ;;  %v1519_v38 = vsub.f32 %v2793_v9, %v2976_v48  ;;  %v1508_v40 = vand.u32 4294901760, %v1507_v22  ;;  %v1411_v11 = vand.u32 4294901760, %v1410_v16  ;;  %v1514_v42 = vand.u32 4294901760, %v1513_v21 }
 0x242   : > { %v2829_v53 = vsub.f32 %v1153_v19, %v2816_v8  ;;  %v1148_v52 = vsel %vm274_vm12, %v1143_v34, %v2638_v20  ;;  %1491 = vmatpush1.msra.mxu1 %v1490_v27  ;;  %1371 = vmatprep.subr.mxu0 %v2816_v8  ;;  %v1526_v34 = vand.u32 4294901760, %v1525_v55 }
 0x243   : > { %v1152_v43 = vsel %vm2272_vm6, %v1148_v52, 0.0  ;;  %1497 = vmatprep.subr.mxu1 %v1496_v10  ;;  %v1520_v48 = vand.u32 4294901760, %v1519_v38 }
 0x244   : > { %v2836_v44 = vand.u32 4294901760, %v1152_v43  ;;  %1503 = vmatpush1.msra.mxu1 %v1502_v56  ;;  %v1530_v19 = vand.u32 4294901760, %v2829_v53 }
 0x245   : > { %1509 = vmatprep.subr.mxu1 %v1508_v40 }
 0x246   : > { %v2840_v20 = vsub.f32 %v1152_v43, %v2836_v44  ;;  %1515 = vmatpush1.msra.mxu1 %v1514_v42  ;;  %1373 = vmatpush1.msra.mxu0 %v2836_v44  ;;  %v1531_v39 = vsub.f32 %v2829_v53, %v1530_v19 }
 0x247   : > { %1521 = vmatprep.subr.mxu1 %v1520_v48  ;;  %1412 = vmatmul.mubr.f32.vlgmr.msra.gmra.mxu0 %v1411_v11 }
 0x248   : > { %v1536_v38 = vand.u32 4294901760, %v2840_v20  ;;  %1527 = vmatpush1.msra.mxu1 %v1526_v34  ;;  %1596 = vmatprep.subr.mxu0 %v2641_v26  ;;  %v1532_v18 = vand.u32 4294901760, %v1531_v39  ;;  %v2994_v26 = vand.u32 4294901760, %v2737_v4 }
 0x249   : > { %1599 = vmatpush1.msra.mxu0 %v2644_v37  ;;  %1680 = vmatprep.mubr.f32.mxu0 %v2096_v0  ;;  %v2995_v37 = vand.u32 4294901760, %v2660_v58 }
 0x24a   : > { %1602 = vmatprep.subr.mxu0 %v2666_v63  ;;  %1533 = vmatprep.subr.mxu1 %v1532_v18  ;;  %v1537_v55 = vsub.f32 %v2840_v20, %v1536_v38  ;;  %v2998_v63 = vand.u32 4294901760, %v2771_v13 }
 0x24b   : > { %1605 = vmatpush1.msra.mxu0 %v2669_v1  ;;  %v2999_v1 = vand.u32 4294901760, %v2695_v36 }
 0x24c   : > { %1608 = vmatprep.subr.mxu0 %v2705_v3  ;;  %v1538_v11 = vand.u32 4294901760, %v1537_v55 }
 0x24d   : > { %1611 = vmatpush1.msra.mxu0 %v2708_v41 }
 0x24e   : > { %1614 = vmatprep.subr.mxu0 %v2745_v15  ;;  %1539 = vmatpush1.msra.mxu1 %v1538_v11 }
 0x24f   : > { %1617 = vmatpush1.msra.mxu0 %v2737_v4  ;;  %1574 = vmatmul.mubr.f32.vlgmr.msra.gmra.mxu1 %v2626_v17 }
 0x250   : > { %1620 = vmatprep.subr.mxu0 %v2633_v28  ;;  %1704 = vmatprep.subr.mxu1 %v2628_v23 }
 0x251   : > { %1623 = vmatpush1.msra.mxu0 %v2624_v31  ;;  %1706 = vmatpush1.msra.mxu1 %v2630_v24 }
 0x252   : > { %1626 = vmatprep.subr.mxu0 %v2771_v13  ;;  %1708 = vmatprep.subr.mxu1 %v2649_v46 }
 0x253   : > { %1629 = vmatpush1.msra.mxu0 %v2695_v36  ;;  %1710 = vmatpush1.msra.mxu1 %v2651_v50 }
 0x254   : > { %1632 = vmatprep.subr.mxu0 %v2722_v29  ;;  %1712 = vmatprep.subr.mxu1 %v2686_v57 }
 0x255   : > { %1635 = vmatpush1.msra.mxu0 %v2754_v51  ;;  %1714 = vmatpush1.msra.mxu1 %v2688_v60 }
 0x256   : > { %1638 = vmatprep.subr.mxu0 %v2793_v9  ;;  %1716 = vmatprep.subr.mxu1 %v2728_v14 }
 0x257   : > { %1641 = vmatpush1.msra.mxu0 %v2768_v49  ;;  %1718 = vmatpush1.msra.mxu1 %v2726_v30 }
 0x258   : > { %1644 = vmatprep.subr.mxu0 %v2829_v53  ;;  %1720 = vmatprep.subr.mxu1 %v2610_v35 }
 0x259   : > { %1647 = vmatpush1.msra.mxu0 %v2840_v20  ;;  %1722 = vmatpush1.msra.mxu1 %v2608_v7 }
 0x25a   : > { %1683 = vmatmul.mubr.f32.vlgmr.msra.gmra.mxu0 %v2660_v58  ;;  %1724 = vmatprep.subr.mxu1 %v2757_v47  ;;  %v1319_v58 = vpop.permute.xlu0 %1318 }
 0x25b   : > { %1798 = vmatprep.subr.mxu0 %v1434_v54  ;;  %1726 = vmatpush1.msra.mxu1 %v2662_v59  ;;  %v2996_v54 = vand.u32 4294901760, %v2633_v28  ;;  %v3000_v28 = vand.u32 4294901760, %v2722_v29 }
 0x25c   : > { %1802 = vmatpush1.msra.mxu0 %v1440_v62  ;;  %1728 = vmatprep.subr.mxu1 %v2690_v2  ;;  %v2997_v62 = vand.u32 4294901760, %v2624_v31  ;;  %v3001_v31 = vand.u32 4294901760, %v2754_v51 }
 0x25d   : > { %1806 = vmatprep.subr.mxu0 %v1446_v6  ;;  %1730 = vmatpush1.msra.mxu1 %v2692_v25 }
 0x25e   : > { %1810 = vmatpush1.msra.mxu0 %v1452_v33  ;;  %1732 = vmatprep.subr.mxu1 %v2776_v5 }
 0x25f   : > { %1814 = vmatprep.subr.mxu0 %v1458_v45  ;;  %1734 = vmatpush1.msra.mxu1 %v2730_v12 }
 0x260   : > { %1818 = vmatpush1.msra.mxu0 %v1464_v32  ;;  %1736 = vmatprep.subr.mxu1 %v2816_v8 }
 0x261   : > { %1822 = vmatprep.subr.mxu0 %v1470_v61  ;;  %1738 = vmatpush1.msra.mxu1 %v2836_v44 }
 0x262   : > { %1771 = vmatprep.mubr.f32.mxu1 %v2096_v0  ;;  %1826 = vmatpush1.msra.mxu0 %v2994_v26 }
 0x263   : > { %1775 = vmatmul.mubr.f32.vlgmr.msra.gmra.mxu1 %v2995_v37  ;;  %1830 = vmatprep.subr.mxu0 %v2996_v54 }
 0x264   : > { %1922 = vmatprep.subr.mxu1 %v2628_v23  ;;  %1834 = vmatpush1.msra.mxu0 %v2997_v62  ;;  %v3002_v23 = vand.u32 4294901760, %v2793_v9 }
 0x265   : > { %1924 = vmatpush1.msra.mxu1 %v2630_v24  ;;  %1838 = vmatprep.subr.mxu0 %v2998_v63  ;;  %v3003_v24 = vand.u32 4294901760, %v2768_v49 }
 0x266   : > { %1926 = vmatprep.subr.mxu1 %v2649_v46  ;;  %1842 = vmatpush1.msra.mxu0 %v2999_v1 }
 0x267   : > { %1928 = vmatpush1.msra.mxu1 %v2651_v50  ;;  %1846 = vmatprep.subr.mxu0 %v3000_v28 }
 0x268   : > { %1930 = vmatprep.subr.mxu1 %v2686_v57  ;;  %1850 = vmatpush1.msra.mxu0 %v3001_v31 }
 0x269   : > { %1932 = vmatpush1.msra.mxu1 %v2688_v60  ;;  %1854 = vmatprep.subr.mxu0 %v3002_v23 }
 0x26a   : > { %1934 = vmatprep.subr.mxu1 %v2728_v14  ;;  %1858 = vmatpush1.msra.mxu0 %v3003_v24 }
 0x26b   : > { %1936 = vmatpush1.msra.mxu1 %v2726_v30  ;;  %1862 = vmatprep.subr.mxu0 %v1530_v19 }
 0x26c   : > { %1938 = vmatprep.subr.mxu1 %v2610_v35  ;;  %1866 = vmatpush1.msra.mxu0 %v1536_v38 }
 0x26d   : > { %1899 = vmatprep.mubr.f32.mxu0 %v2096_v0  ;;  %1940 = vmatpush1.msra.mxu1 %v2608_v7 }
 0x26e   : > { %1901 = vmatmul.mubr.f32.vlgmr.msra.gmra.mxu0 %v2626_v17  ;;  %1942 = vmatprep.subr.mxu1 %v2757_v47 }
 0x26f   : > { %1944 = vmatpush1.msra.mxu1 %v2662_v59  ;;  %1989 = vmatprep.mubr.f32.mxu1 %v2096_v0 }
 0x270   : > { %1946 = vmatprep.subr.mxu1 %v2690_v2 }
 0x271   : > { %1948 = vmatpush1.msra.mxu1 %v2692_v25 }
 0x272   : > { %1950 = vmatprep.subr.mxu1 %v2776_v5 }
 0x273   : > { %1952 = vmatpush1.msra.mxu1 %v2730_v12 }
 0x274   : > { %1954 = vmatprep.subr.mxu1 %v2816_v8 }
 0x275   : > { %1956 = vmatpush1.msra.mxu1 %v2836_v44 }
 0x276   : > { %1991 = vmatmul.mubr.f32.vlgmr.msra.gmra.mxu1 %v2626_v17 }
 0x307   : > { %v1413_v7 = vpop.f32.mrf.mxu0 }
 0x308   : > { %v1414_v59 = vadd.f32 %v1413_v7, %v1319_v58 }
 0x309   : > { %v1415_v35 = vpop.f32.mrf.mxu0 }
 0x30a   : > { %v1416_v60 = vadd.f32 %v1415_v35, %v1319_v58 }
 0x30f   : > { %v1575_v46 = vpop.f32.mrf.mxu1 }
 0x310   : > { %v1576_v2 = vadd.f32 %v1575_v46, %v1414_v59 }
 0x311   : > { %v1577_v0 = vpop.f32.mrf.mxu1 }
 0x312   : > { %v1578_v36 = vadd.f32 %v1577_v0, %v1416_v60 }
 0x31a   : > { %v1684_v50 = vpop.f32.mrf.mxu0 }
 0x31b   : > { %v1685_v6 = vadd.f32 %v1684_v50, %v1576_v2 }
 0x31c   : > { %v1686_v33 = vpop.f32.mrf.mxu0 }
 0x31d   : > { %v1687_v41 = vadd.f32 %v1686_v33, %v1578_v36 }
 0x323   : > { %v1776_v57 = vpop.f32.mrf.mxu1 }
 0x324   : > { %v1777_v32 = vadd.f32 %v1776_v57, %v1685_v6 }
 0x325   : > { %v1778_v3 = vpop.f32.mrf.mxu1 }
 0x326   : > { %v1779_v17 = vadd.f32 %v1778_v3, %v1687_v41 }
 0x32e   : > { %v1902_v25 = vpop.f32.mrf.mxu0 }
 0x32f   : > { %v1903_v30 = vadd.f32 %v1902_v25, %v1777_v32 }
 0x330   : > { %v1904_v29 = vpop.f32.mrf.mxu0 }
 0x331   : > { %v1905_v12 = vadd.f32 %v1904_v29, %v1779_v17 }
 0x336   : > { %v1992_v14 = vpop.f32.mrf.mxu1 }
 0x337   : > { %v1993_v45 = vadd.f32 %v1992_v14, %v1903_v30 }
 0x338   : > { %v1994_v4 = vpop.f32.mrf.mxu1 }
 0x339   : > { %v1997_v15 = vmax.f32 %v1993_v45, 0.0  ;;  %v1995_v51 = vadd.f32 %v1994_v4, %v1905_v12 }
 0x33b   : > { %1999 = vst [vmem:[%s224_s17] sm:$0xff] %v1997_v15  ;;  %v1998_v44 = vmax.f32 %v1995_v51, 0.0 }
 0x33d   : > { %2000 = vst [vmem:[%s224_s17 + $0x8] sm:$0xff] %v1998_v44 }
 0x33e PF: > { %s15_s18 = sadd.s32 1, %s2094_s18  }
 0x33f   : > { %p12_p4 = scmp.ge.s32.totalorder %s15_s18, 4  }
 0x341   :  { %14 = sbr.rel (!%p12_p4) target bundleno = 1 (0x1), region = 70 }

// kernel: double_conv.1
= control target key start
LH: loop header
LB: loop body
LE: loop exit
PB: predicated region body
PF: predicated region fallthrough
CT: control target
= control target key end

     0   :  { %s958_s18 = smov 0   ;;  %s1191_s0 = inlined_call_operand.vmem [shape: f32[2,8,256], index: 0, kind: input, shape index: {}]   ;;  %s1192_s1 = inlined_call_operand.vmem [shape: f32[8,72], index: 1, kind: input, shape index: {}]   ;;  %s1193_s2 = inlined_call_operand.vmem [shape: f32[8,1], index: 2, kind: input, shape index: {}]   ;;  %s1194_s3 = inlined_call_operand.vmem [shape: f32[8,72], index: 3, kind: input, shape index: {}]   ;;  %s1195_s4 = inlined_call_operand.vmem [shape: f32[8,1], index: 4, kind: input, shape index: {}]   ;;  %s1196_s5 = inlined_call_operand.vmem [shape: f32[2,8,256], index: 5, kind: output, shape index: {}]  }
   0x1 LB: > { %s852_s19 = sadd.s32 4294967295, %s916_s18   ;;  %p856_p0 = scmp.ge.s32.totalorder %s916_s18, 1  ;;  %s916_s18 = sphi %s958_s18, %s15_s18  }
   0x2   : > { %p187_p1 = scmp.lt.s32.totalorder %s916_s18, 3 }
   0x4   : > { %p188_p2 = pnand %p856_p0, %p187_p1 }
   0x5   : > { %p215_p3 = scmp.lt.s32.totalorder (!%p188_p2), %s852_s19, 1  ;;  %s919_s20 = smov (!%p188_p2), 111  }
   0x6   : > { %191 = sbr.rel (%p188_p2) target bundleno = 726 (0x2d6), region = 40  ;;  %s920_s25 = smov (!%p188_p2), 112  }
   0x7   : > { %s921_s26 = smov (!%p188_p2), 113   ;;  %s922_s27 = smov (!%p188_p2), 127  }
   0x8   : > { %s923_s28 = smov (!%p188_p2), 1   ;;  %s924_s29 = smov (!%p188_p2), 15  }
   0x9   : > { %s925_s30 = smov (!%p188_p2), 16   ;;  %s927_s6 = smov (!%p188_p2), 17  }
   0xb   : > { %v918_v0 = vmov 0.0   ;;  %s1206_s19 = smov (!%p215_p3, %s852_s19), 1  ;;  %v926_v3 = vmov 0   ;;  %v449_v4 = vld [vmem:[%s1193_s2] sm:$0xff]  ;;  %v225_v5 = vlaneseq  ;;  %vm421_vm0 = vcmask 908288  }
   0xc   : > { %419 = vrot.lane.b32.xlu0 %v918_v0, %s919_s20  ;;  %523 = vmatprep.mubr.f32.mxu0 %v918_v0  ;;  %s865_s21 = sshll.u32 %s1206_s19, 4  ;;  %vm402_vm3 = vcmask 916480   ;;  %vm381_vm4 = vcmask 924672   ;;  %vm360_vm7 = vcmask 1039360   ;;  %vm335_vm8 = vcmask 7168   ;;  %v430_v53 = vld [vmem:[%s1192_s1] sm:$0xff] }
   0xd   : > { %786 = vmatprep.mubr.f32.mxu1 %v918_v0  ;;  %s219_s24 = scalar_lea.vmem %s1191_s0, %s865_s21  ;;  %909 = vset.pattern.permute.xlu0 %v926_v3  ;;  %v226_v6 = vand.u32 127, %v225_v5  ;;  %vm314_vm9 = vcmask 121856   ;;  %vm295_vm10 = vcmask 130048   ;;  %vm274_vm11 = vcmask 138240   ;;  %v713_v62 = vld [vmem:[%s1195_s4] sm:$0xff]  ;;  %s224_s17 = scalar_lea.vmem %s1196_s5, %s865_s21 }
   0xe   : > { %v978_v1 = vld [vmem:[%s219_s24 + $0x8] sm:$0xff]  ;;  %v980_v2 = vld [vmem:[%s219_s24] sm:$0xff]  ;;  %vm455_vm12 = vcmask 588800  }
   0xf   : > { %415 = vrot.lane.b32.xlu1 %v980_v2, %s919_s20  ;;  %v227_v7 = vadd.s32 128, %v226_v6  ;;  %v232_v10 = vand.u32 15, %v226_v6  ;;  %v694_v11 = vld [vmem:[%s1194_s3] sm:$0xff] }
  0x10   : > { %417 = vrot.lane.b32.xlu0 %v978_v1, %s919_s20 }
  0x11   : > { %v239_v9 = vand.u32 15, %v227_v7  ;;  %vm1047_vm2 = vcmp.le.s32.totalorder %v232_v10, 14  ;;  %vm1063_vm6 = vcmp.ge.s32.totalorder %v232_v10, 1 }
  0x13   : > { %398 = vrot.lane.b32.xlu1 %v978_v1, %s920_s25  ;;  %vm1043_vm1 = vcmp.le.s32.totalorder %v239_v9, 14  ;;  %vm1059_vm5 = vcmp.ge.s32.totalorder %v239_v9, 1 }
  0x14   : > { %400 = vrot.lane.b32.xlu0 %v918_v0, %s920_s25 }
  0x17   : > { %396 = vrot.lane.b32.xlu1 %v980_v2, %s920_s25 }
  0x18   : > { %377 = vrot.lane.b32.xlu0 %v978_v1, %s921_s26 }
  0x1b   : > { %379 = vrot.lane.b32.xlu1 %v918_v0, %s921_s26 }
  0x1c   : > { %375 = vrot.lane.b32.xlu0 %v980_v2, %s921_s26 }
  0x1f   : > { %356 = vrot.lane.b32.xlu1 %v978_v1, %s922_s27 }
  0x20   : > { %358 = vrot.lane.b32.xlu0 %v918_v0, %s922_s27 }
  0x23   : > { %354 = vrot.lane.b32.xlu1 %v980_v2, %s922_s27 }
  0x24   : > { %331 = vrot.lane.b32.xlu0 %v980_v2, %s923_s28 }
  0x27   : > { %333 = vrot.lane.b32.xlu1 %v978_v1, %s923_s28 }
  0x28   : > { %329 = vrot.lane.b32.xlu0 %v918_v0, %s923_s28 }
  0x2b   : > { %310 = vrot.lane.b32.xlu1 %v980_v2, %s924_s29 }
  0x2c   : > { %312 = vrot.lane.b32.xlu0 %v978_v1, %s924_s29 }
  0x2f   : > { %308 = vrot.lane.b32.xlu1 %v918_v0, %s924_s29 }
  0x30   : > { %291 = vrot.lane.b32.xlu0 %v980_v2, %s925_s30 }
  0x33   : > { %293 = vrot.lane.b32.xlu1 %v978_v1, %s925_s30 }
  0x34   : > { %289 = vrot.lane.b32.xlu0 %v918_v0, %s925_s30 }
  0x37   : > { %270 = vrot.lane.b32.xlu1 %v980_v2, %s927_s6 }
  0x38   : > { %272 = vrot.lane.b32.xlu0 %v978_v1, %s927_s6 }
  0x3b   : > { %268 = vrot.lane.b32.xlu1 %v918_v0, %s927_s6 }
  0x3c   : > { %452 = vperm.xlu0 %909, %v449_v4  }
  0x3f   : > { %684 = vrot.lane.b32.xlu1 %v918_v0, %s919_s20 }
  0x40   : > { %666 = vrot.lane.b32.xlu0 %v918_v0, %s920_s25 }
  0x43   : > { %646 = vrot.lane.b32.xlu1 %v918_v0, %s921_s26 }
  0x44   : > { %626 = vrot.lane.b32.xlu0 %v918_v0, %s922_s27 }
  0x47   : > { %578 = vrot.lane.b32.xlu1 %v918_v0, %s924_s29 }
  0x48   : > { %598 = vrot.lane.b32.xlu0 %v918_v0, %s923_s28 }
  0x7e   : > { %v420_v8 = vpop.permute.xlu0 %419 }
  0x81   : > { %v416_v13 = vpop.permute.xlu1 %415 }
  0x82   : > { %v418_v12 = vpop.permute.xlu0 %417 }
  0x83   : > { %v423_v15 = vsel %vm421_vm0, %v418_v12, %v420_v8  ;;  %v422_v16 = vsel %vm421_vm0, %v416_v13, %v418_v12 }
  0x84   : > { %867 = vmatprep.subr.msk.mxu0 %vm1043_vm1, %v423_v15 }
  0x85   : > { %868 = vmatpush1.msk.msra.mxu0 %vm1047_vm2, %v422_v16  ;;  %v399_v18 = vpop.permute.xlu1 %398 }
  0x86   : > { %v401_v17 = vpop.permute.xlu0 %400 }
  0x87   : > { %v404_v19 = vsel %vm402_vm3, %v399_v18, %v401_v17 }
  0x88   : > { %475 = vmatprep.subr.mxu0 %v404_v19 }
  0x89   : > { %v397_v21 = vpop.permute.xlu1 %396 }
  0x8a   : > { %v378_v20 = vpop.permute.xlu0 %377  ;;  %v403_v22 = vsel %vm402_vm3, %v397_v21, %v399_v18 }
  0x8b   : > { %476 = vmatpush1.msra.mxu0 %v403_v22 }
  0x8d   : > { %v380_v25 = vpop.permute.xlu1 %379 }
  0x8e   : > { %v376_v24 = vpop.permute.xlu0 %375  ;;  %v383_v28 = vsel %vm381_vm4, %v378_v20, %v380_v25 }
  0x8f   : > { %v382_v27 = vsel %vm381_vm4, %v376_v24, %v378_v20  ;;  %869 = vmatprep.subr.msk.mxu0 %vm1059_vm5, %v383_v28 }
  0x90   : > { %870 = vmatpush1.msk.msra.mxu0 %vm1063_vm6, %v382_v27 }
  0x91   : > { %v357_v30 = vpop.permute.xlu1 %356 }
  0x92   : > { %v359_v29 = vpop.permute.xlu0 %358 }
  0x93   : > { %v362_v31 = vsel %vm360_vm7, %v357_v30, %v359_v29 }
  0x94   : > { %871 = vmatprep.subr.msk.mxu0 %vm1043_vm1, %v362_v31 }
  0x95   : > { %v355_v33 = vpop.permute.xlu1 %354 }
  0x96   : > { %v332_v32 = vpop.permute.xlu0 %331  ;;  %v361_v34 = vsel %vm360_vm7, %v355_v33, %v357_v30 }
  0x97   : > { %872 = vmatpush1.msk.msra.mxu0 %vm1047_vm2, %v361_v34 }
  0x98   : > { %481 = vmatprep.subr.mxu0 %v978_v1 }
  0x99   : > { %v334_v36 = vpop.permute.xlu1 %333  ;;  %482 = vmatpush1.msra.mxu0 %v980_v2 }
  0x9a   : > { %v330_v35 = vpop.permute.xlu0 %329  ;;  %v337_v38 = vsel %vm335_vm8, %v332_v32, %v334_v36 }
  0x9b   : > { %v336_v37 = vsel %vm335_vm8, %v330_v35, %v332_v32  ;;  %873 = vmatprep.subr.msk.mxu0 %vm1059_vm5, %v337_v38 }
  0x9c   : > { %874 = vmatpush1.msk.msra.mxu0 %vm1063_vm6, %v336_v37 }
  0x9d   : > { %v311_v40 = vpop.permute.xlu1 %310 }
  0x9e   : > { %v313_v39 = vpop.permute.xlu0 %312 }
  0x9f   : > { %v316_v41 = vsel %vm314_vm9, %v311_v40, %v313_v39 }
  0xa0   : > { %875 = vmatprep.subr.msk.mxu0 %vm1043_vm1, %v316_v41 }
  0xa1   : > { %v309_v43 = vpop.permute.xlu1 %308 }
  0xa2   : > { %v292_v42 = vpop.permute.xlu0 %291  ;;  %v315_v44 = vsel %vm314_vm9, %v309_v43, %v311_v40 }
  0xa3   : > { %876 = vmatpush1.msk.msra.mxu0 %vm1047_vm2, %v315_v44 }
  0xa5   : > { %v294_v46 = vpop.permute.xlu1 %293 }
  0xa6   : > { %v290_v45 = vpop.permute.xlu0 %289  ;;  %v297_v47 = vsel %vm295_vm10, %v292_v42, %v294_v46 }
  0xa7   : > { %v296_v48 = vsel %vm295_vm10, %v290_v45, %v292_v42  ;;  %487 = vmatprep.subr.mxu0 %v297_v47 }
  0xa8   : > { %488 = vmatpush1.msra.mxu0 %v296_v48 }
  0xa9   : > { %v271_v50 = vpop.permute.xlu1 %270 }
  0xaa   : > { %v273_v49 = vpop.permute.xlu0 %272 }
  0xab   : > { %v276_v51 = vsel %vm274_vm11, %v271_v50, %v273_v49 }
  0xac   : > { %877 = vmatprep.subr.msk.mxu0 %vm1059_vm5, %v276_v51 }
  0xad   : > { %v269_v52 = vpop.permute.xlu1 %268 }
  0xae   : > { %v275_v54 = vsel %vm274_vm11, %v269_v52, %v271_v50 }
  0xaf   : > { %878 = vmatpush1.msk.msra.mxu0 %vm1063_vm6, %v275_v54 }
  0xb0   : > { %861 = vmatmul.mubr.msk.f32.vlgmr.msra.gmra.mxu0 %vm455_vm12, %v430_v53 }
  0xb1   : > { %v685_v1 = vpop.permute.xlu1 %684 }
  0xb5   : > { %v647_v3 = vpop.permute.xlu1 %646 }
  0xb7   : > { %v453_v55 = vpop.permute.xlu0 %452 }
  0xb9   : > { %v579_v5 = vpop.permute.xlu1 %578 }
  0xbb   : > { %v667_v63 = vpop.permute.xlu0 %666 }
  0xbf   : > { %v627_v2 = vpop.permute.xlu0 %626 }
  0xc3   : > { %v599_v4 = vpop.permute.xlu0 %598 }
 0x170   : > { %v525_v56 = vpop.f32.mrf.mxu0 }
 0x171   : > { %v526_v57 = vadd.f32 %v525_v56, %v453_v55 }
 0x172   : > { %v527_v59 = vpop.f32.mrf.mxu0 }
 0x173   : > { %v1105_v58 = vmax.f32 %v526_v57, 0.0  ;;  %v528_v60 = vadd.f32 %v527_v59, %v453_v55 }
 0x175   : > { %662 = vrot.lane.b32.xlu1 %v1105_v58, %s920_s25  ;;  %680 = vrot.lane.b32.xlu0 %v1105_v58, %s919_s20  ;;  %v531_v61 = vmax.f32 %v528_v60, 0.0 }
 0x179   : > { %622 = vrot.lane.b32.xlu1 %v1105_v58, %s922_s27  ;;  %642 = vrot.lane.b32.xlu0 %v1105_v58, %s921_s26 }
 0x17d   : > { %580 = vrot.lane.b32.xlu1 %v1105_v58, %s924_s29  ;;  %600 = vrot.lane.b32.xlu0 %v1105_v58, %s923_s28 }
 0x181   : > { %682 = vrot.lane.b32.xlu1 %v531_v61, %s919_s20  ;;  %562 = vrot.lane.b32.xlu0 %v1105_v58, %s925_s30 }
 0x185   : > { %664 = vrot.lane.b32.xlu1 %v531_v61, %s920_s25  ;;  %644 = vrot.lane.b32.xlu0 %v531_v61, %s921_s26 }
 0x189   : > { %542 = vrot.lane.b32.xlu1 %v1105_v58, %s927_s6  ;;  %560 = vrot.lane.b32.xlu0 %v918_v0, %s925_s30 }
 0x18d   : > { %624 = vrot.lane.b32.xlu1 %v531_v61, %s922_s27  ;;  %582 = vrot.lane.b32.xlu0 %v531_v61, %s924_s29 }
 0x191   : > { %602 = vrot.lane.b32.xlu1 %v531_v61, %s923_s28  ;;  %544 = vrot.lane.b32.xlu0 %v531_v61, %s927_s6 }
 0x195   : > { %564 = vrot.lane.b32.xlu1 %v531_v61, %s925_s30  ;;  %716 = vperm.xlu0 %909, %v713_v62  }
 0x199   : > { %540 = vrot.lane.b32.xlu1 %v918_v0, %s927_s6 }
 0x1e7   : > { %v681_v6 = vpop.permute.xlu0 %680  ;;  %v663_v7 = vpop.permute.xlu1 %662 }
 0x1eb   : > { %v643_v8 = vpop.permute.xlu0 %642  ;;  %v623_v9 = vpop.permute.xlu1 %622 }
 0x1ef   : > { %v601_v10 = vpop.permute.xlu0 %600  ;;  %v581_v12 = vpop.permute.xlu1 %580 }
 0x1f0   : > { %v604_v33 = vsel %vm335_vm8, %v599_v4, %v601_v10  ;;  %v584_v35 = vsel %vm314_vm9, %v579_v5, %v581_v12 }
 0x1f3   : > { %v563_v13 = vpop.permute.xlu0 %562  ;;  %v683_v15 = vpop.permute.xlu1 %682 }
 0x1f4   : > { %v687_v16 = vsel %vm421_vm0, %v683_v15, %v685_v1  ;;  %v686_v17 = vsel %vm421_vm0, %v681_v6, %v683_v15 }
 0x1f5   : > { %879 = vmatprep.subr.msk.mxu1 %vm1043_vm1, %v687_v16 }
 0x1f6   : > { %880 = vmatpush1.msk.msra.mxu1 %vm1047_vm2, %v686_v17 }
 0x1f7   : > { %v645_v0 = vpop.permute.xlu0 %644  ;;  %v665_v18 = vpop.permute.xlu1 %664 }
 0x1f8   : > { %v669_v19 = vsel %vm402_vm3, %v665_v18, %v667_v63  ;;  %v668_v20 = vsel %vm402_vm3, %v663_v7, %v665_v18  ;;  %v649_v21 = vsel %vm381_vm4, %v645_v0, %v647_v3  ;;  %v648_v22 = vsel %vm381_vm4, %v643_v8, %v645_v0 }
 0x1f9   : > { %738 = vmatprep.subr.mxu1 %v669_v19 }
 0x1fa   : > { %739 = vmatpush1.msra.mxu1 %v668_v20 }
 0x1fb   : > { %v561_v24 = vpop.permute.xlu0 %560  ;;  %881 = vmatprep.subr.msk.mxu1 %vm1059_vm5, %v649_v21  ;;  %v543_v25 = vpop.permute.xlu1 %542 }
 0x1fc   : > { %882 = vmatpush1.msk.msra.mxu1 %vm1063_vm6, %v648_v22  ;;  %v566_v39 = vsel %vm295_vm10, %v561_v24, %v563_v13 }
 0x1ff   : > { %v625_v27 = vpop.permute.xlu1 %624  ;;  %v583_v30 = vpop.permute.xlu0 %582 }
 0x200   : > { %v628_v28 = vsel %vm360_vm7, %v623_v9, %v625_v27  ;;  %v629_v29 = vsel %vm360_vm7, %v625_v27, %v627_v2  ;;  %v585_v34 = vsel %vm314_vm9, %v581_v12, %v583_v30 }
 0x201   : > { %883 = vmatprep.subr.msk.mxu1 %vm1043_vm1, %v629_v29 }
 0x202   : > { %884 = vmatpush1.msk.msra.mxu1 %vm1047_vm2, %v628_v28 }
 0x203   : > { %744 = vmatprep.subr.mxu1 %v531_v61  ;;  %v603_v31 = vpop.permute.xlu1 %602  ;;  %v545_v36 = vpop.permute.xlu0 %544 }
 0x204   : > { %v605_v32 = vsel %vm335_vm8, %v601_v10, %v603_v31  ;;  %745 = vmatpush1.msra.mxu1 %v1105_v58  ;;  %v547_v40 = vsel %vm274_vm11, %v543_v25, %v545_v36 }
 0x205   : > { %885 = vmatprep.subr.msk.mxu1 %vm1059_vm5, %v605_v32 }
 0x206   : > { %886 = vmatpush1.msk.msra.mxu1 %vm1063_vm6, %v604_v33 }
 0x207   : > { %887 = vmatprep.subr.msk.mxu1 %vm1043_vm1, %v585_v34  ;;  %v565_v37 = vpop.permute.xlu1 %564 }
 0x208   : > { %888 = vmatpush1.msk.msra.mxu1 %vm1047_vm2, %v584_v35  ;;  %v567_v38 = vsel %vm295_vm10, %v563_v13, %v565_v37 }
 0x209   : > { %750 = vmatprep.subr.mxu1 %v567_v38 }
 0x20a   : > { %751 = vmatpush1.msra.mxu1 %v566_v39 }
 0x20b   : > { %889 = vmatprep.subr.msk.mxu1 %vm1059_vm5, %v547_v40  ;;  %v541_v41 = vpop.permute.xlu1 %540 }
 0x20c   : > { %v546_v14 = vsel %vm274_vm11, %v541_v41, %v543_v25 }
 0x20d   : > { %890 = vmatpush1.msk.msra.mxu1 %vm1063_vm6, %v546_v14 }
 0x20e   : > { %862 = vmatmul.mubr.msk.f32.vlgmr.msra.gmra.mxu1 %vm455_vm12, %v694_v11 }
 0x210   : > { %v717_v42 = vpop.permute.xlu0 %716 }
 0x2ce   : > { %v788_v43 = vpop.f32.mrf.mxu1 }
 0x2cf   : > { %v789_v44 = vadd.f32 %v788_v43, %v717_v42 }
 0x2d0   : > { %v790_v23 = vpop.f32.mrf.mxu1 }
 0x2d1   : > { %v793_v45 = vmax.f32 %v789_v44, 0.0  ;;  %v791_v46 = vadd.f32 %v790_v23, %v717_v42 }
 0x2d3   : > { %795 = vst [vmem:[%s224_s17] sm:$0xff] %v793_v45  ;;  %v794_v47 = vmax.f32 %v791_v46, 0.0 }
 0x2d5   : > { %796 = vst [vmem:[%s224_s17 + $0x8] sm:$0xff] %v794_v47 }
 0x2d6 PF: > { %s15_s18 = sadd.s32 1, %s916_s18  }
 0x2d7   : > { %p12_p4 = scmp.ge.s32.totalorder %s15_s18, 4  }
 0x2d9   :  { %14 = sbr.rel (!%p12_p4) target bundleno = 1 (0x1), region = 70 }

</bundles_post_ra>
